<compile_context>
chip_gen: v5e
topology: v5e:2x2
jax: 0.10.0
libtpu: 0.0.40
codegen_flags: <defaults>
</compile_context>

<pallas_src>
import jax
import jax.numpy as jnp
from jax import lax
from jax.experimental import pallas as pl

# ----------------------------- configuration -------------------------------
B = 2            # number of point clouds (batches)
NPB = 16         # points per cloud
C = 4            # input feature channels
H = 32           # hidden width of the PointNetConv local MLP
F = 32           # output feature channels
RATIO = 0.5
MPB = int(NPB * RATIO)          # centroids per cloud (= 8)
RADIUS = 0.5
CURV_SCALAR = 2.0
NEG_INF = -1e30                 # Python floats only (no captured jnp consts)
BIG = 1e30


# --------------------------- fused SA-module kernel -------------------------
def sa_kernel(x_ref, pos_ref, curv_ref,
              w1x_ref, w1d_ref, b1_ref, w2_ref, b2_ref,
              xo_ref, cpos_ref, ccurv_ref):
    # x_ref   : (B, NPB, C)   point features
    # pos_ref : (B, NPB, 3)   point positions
    # curv_ref: (B, NPB, 1)   curvature per point
    # w1x_ref : (C, H)  w1d_ref: (3, H)  b1_ref: (1, H)
    # w2_ref  : (H, F)  b2_ref : (1, F)
    # xo_ref  : (B*MPB, F)    aggregated centroid features (lane-dense slab)
    # cpos_ref: (B, MPB, 3)   selected centroid positions
    # ccurv_ref:(B, MPB, 1)   selected centroid curvatures
    p = pos_ref[...]                     # (B, NPB, 3)
    x = x_ref[...]                       # (B, NPB, C)
    curv = curv_ref[...]                 # (B, NPB, 1)

    # ---- curvature-weighted FPS (all B clouds vectorized) -------------------
    # pairwise squared distances via one MXU matmul: |pi|^2 + |pj|^2 - 2 pi.pj
    pnorm = jnp.sum(p * p, axis=-1)                                   # (B, NPB)
    gram = jnp.einsum('bid,bjd->bij', p, p,
                      preferred_element_type=jnp.float32)             # (B, NPB, NPB)
    D = jnp.maximum(pnorm[:, :, None] + pnorm[:, None, :] - 2.0 * gram, 0.0)

    weight = 1.0 + CURV_SCALAR * curv[:, :, 0]                        # (B, NPB)
    ids = lax.broadcasted_iota(jnp.int32, (B, NPB), 1)                # point ids
    slot_ids = lax.broadcasted_iota(jnp.int32, (B, MPB, NPB), 1)      # selection slot

    def body(t, carry):
        min_d, S, cur = carry    # (B,NPB), (B,MPB,NPB), (B,1,NPB) one-hot
        S = jnp.where(slot_ids == t, cur, S)            # record pick t
        d = jnp.einsum('bon,bnm->bom', cur, D,
                       preferred_element_type=jnp.float32)[:, 0, :]   # row of D
        min_d = jnp.minimum(min_d, d)
        score = min_d * weight                          # weighted FPS score
        m = jnp.max(score, axis=-1, keepdims=True)      # (B, 1)
        nxt = jnp.min(jnp.where(score == m, ids, NPB),
                      axis=-1, keepdims=True)           # smallest argmax index
        cur = (ids == nxt).astype(jnp.float32)[:, None, :]            # (B,1,NPB)
        return (min_d, S, cur)

    min_d0 = jnp.full((B, NPB), BIG, dtype=jnp.float32)
    S0 = jnp.zeros((B, MPB, NPB), dtype=jnp.float32)
    cur0 = (ids == 0).astype(jnp.float32)[:, None, :]   # deterministic start
    _, S, _ = lax.fori_loop(0, MPB, body, (min_d0, S0, cur0), unroll=True)

    # centroid gathers as exact one-hot matmuls (no XLA gather, no 2nd launch)
    cpos = jnp.einsum('bmn,bnd->bmd', S, p,
                      preferred_element_type=jnp.float32)             # (B, MPB, 3)
    ccurv = jnp.einsum('bmn,bnd->bmd', S, curv,
                       preferred_element_type=jnp.float32)            # (B, MPB, 1)

    # ---- radius grouping + PointNetConv message MLP + max aggregation -------
    # dense neighbourhood is exact because NPB <= max_num_neighbors (64)
    diff = p[:, None, :, :] - cpos[:, :, None, :]        # (B, MPB, NPB, 3) = pos_j - pos_i
    d2 = jnp.sum(diff * diff, axis=-1)                   # (B, MPB, NPB)
    mask = d2 <= (RADIUS * RADIUS)

    # layer 1: Linear(C+3 -> H) split into feature part + relative-pos part,
    # both fed to the MXU as flat 2-D matmuls
    hx = jnp.dot(x.reshape(B * NPB, C), w1x_ref[...],
                 preferred_element_type=jnp.float32)                  # (B*NPB, H)
    hd = jnp.dot(diff.reshape(B * MPB * NPB, 3), w1d_ref[...],
                 preferred_element_type=jnp.float32)                  # (B*MPB*NPB, H)
    h1 = jnp.maximum(hx.reshape(B, 1, NPB, H)
                     + hd.reshape(B, MPB, NPB, H)
                     + b1_ref[...], 0.0)                              # (B, MPB, NPB, H)

    # layer 2: Linear(H -> F) + ReLU
    h2 = jnp.maximum(jnp.dot(h1.reshape(B * MPB * NPB, H), w2_ref[...],
                             preferred_element_type=jnp.float32)
                     + b2_ref[...], 0.0)                              # (B*MPB*NPB, F)
    h2 = h2.reshape(B, MPB, NPB, F)

    # max aggregation over in-radius neighbours (each centroid is its own
    # neighbour, so no neighbourhood is empty)
    h2 = jnp.where(mask[:, :, :, None], h2, NEG_INF)
    out = jnp.max(h2, axis=2)                            # (B, MPB, F)

    xo_ref[...] = out.reshape(B * MPB, F)
    cpos_ref[...] = cpos
    ccurv_ref[...] = ccurv


# ------------------------------ glue / wrapper ------------------------------
def init_params(key):
    k1, k2 = jax.random.split(key, 2)
    w1 = jax.random.normal(k1, (C + 3, H), jnp.float32) * 0.1
    b1 = jnp.zeros((1, H), jnp.float32)
    w2 = jax.random.normal(k2, (H, F), jnp.float32) * 0.1
    b2 = jnp.zeros((1, F), jnp.float32)
    # split layer-1 weight into feature rows and relative-position rows
    return (w1[:C, :], w1[C:, :], b1, w2, b2)


@jax.jit
def sa_module_forward(params, x, pos, batch, curvature_values):
    # assumes equal-sized, contiguous (sorted) batches — synthetic setting
    w1x, w1d, b1, w2, b2 = params
    pos_b = pos.reshape(B, NPB, 3)
    x_b = x.reshape(B, NPB, C)
    curv_b = curvature_values.reshape(B, NPB, 1)

    # single fused pallas_call: FPS sampling + centroid gather + radius
    # grouping + PointNetConv.  Whole problem is one VMEM block (no grid).
    x_out, cpos, ccurv = pl.pallas_call(
        sa_kernel,
        out_shape=(
            jax.ShapeDtypeStruct((B * MPB, F), jnp.float32),
            jax.ShapeDtypeStruct((B, MPB, 3), jnp.float32),
            jax.ShapeDtypeStruct((B, MPB, 1), jnp.float32),
        ),
    )(x_b, pos_b, curv_b, w1x, w1d, b1, w2, b2)

    pos_out = cpos.reshape(B * MPB, 3)
    curv_out = ccurv.reshape(B * MPB)
    # batches are contiguous and equal-sized, so batch[idx] == repeat(arange(B))
    batch_out = jnp.repeat(jnp.arange(B, dtype=batch.dtype), MPB)
    return x_out, pos_out, batch_out, curv_out


# ---------------------------------- main ------------------------------------
if __name__ == "__main__":
    key = jax.random.PRNGKey(0)
    kp, kx, kc, kw = jax.random.split(key, 4)

    pos = jax.random.uniform(kp, (B * NPB, 3), jnp.float32)
    x = jax.random.normal(kx, (B * NPB, C), jnp.float32) * 0.5
    curvature_values = jax.random.uniform(kc, (B * NPB,), jnp.float32)
    batch = jnp.repeat(jnp.arange(B, dtype=jnp.int32), NPB)

    params = init_params(kw)

    x_out, pos_out, batch_out, curv_out = jax.block_until_ready(
        sa_module_forward(params, x, pos, batch, curvature_values))

    assert x_out.shape == (B * MPB, F)
    assert pos_out.shape == (B * MPB, 3)
    assert batch_out.shape == (B * MPB,)
    assert curv_out.shape == (B * MPB,)
    assert bool(jnp.all(jnp.isfinite(x_out)))

    print("KERNEL_OK")
</pallas_src>

<mosaic_0001>
module attributes {stable_mosaic.version = 11 : i64} {
  func.func @sa_kernel(%arg0: memref<2x16x4xf32, #tpu.memory_space<vmem>>, %arg1: memref<2x16x3xf32, #tpu.memory_space<vmem>>, %arg2: memref<2x16x1xf32, #tpu.memory_space<vmem>>, %arg3: memref<4x32xf32, #tpu.memory_space<vmem>>, %arg4: memref<3x32xf32, #tpu.memory_space<vmem>>, %arg5: memref<1x32xf32, #tpu.memory_space<vmem>>, %arg6: memref<32x32xf32, #tpu.memory_space<vmem>>, %arg7: memref<1x32xf32, #tpu.memory_space<vmem>>, %arg8: memref<16x32xf32, #tpu.memory_space<vmem>>, %arg9: memref<2x8x3xf32, #tpu.memory_space<vmem>>, %arg10: memref<2x8x1xf32, #tpu.memory_space<vmem>>) attributes {dimension_semantics = [], scalar_prefetch = 0 : i64, scratch_operands = 0 : i64, tpu.core_type = #tpu.core_type<tc>} {
    %c0 = arith.constant 0 : index
    %c0_0 = arith.constant 0 : index
    %c0_1 = arith.constant 0 : index
    %0 = vector.load %arg1[%c0, %c0_0, %c0_1] : memref<2x16x3xf32, #tpu.memory_space<vmem>>, vector<2x16x3xf32>
    %c0_2 = arith.constant 0 : index
    %c0_3 = arith.constant 0 : index
    %c0_4 = arith.constant 0 : index
    %1 = vector.load %arg0[%c0_2, %c0_3, %c0_4] : memref<2x16x4xf32, #tpu.memory_space<vmem>>, vector<2x16x4xf32>
    %c0_5 = arith.constant 0 : index
    %c0_6 = arith.constant 0 : index
    %c0_7 = arith.constant 0 : index
    %2 = vector.load %arg2[%c0_5, %c0_6, %c0_7] : memref<2x16x1xf32, #tpu.memory_space<vmem>>, vector<2x16x1xf32>
    %3 = arith.mulf %0, %0 : vector<2x16x3xf32>
    %cst = arith.constant dense<0.000000e+00> : vector<2x16xf32>
    %4 = vector.multi_reduction <add>, %3, %cst [2] : vector<2x16x3xf32> to vector<2x16xf32>
    "tpu.trace_start"() <{level = 10 : i32, message = "bid,bjd->bij"}> : () -> ()
    %cst_8 = arith.constant dense<0.000000e+00> : vector<2x16x16xf32>
    %5 = tpu.matmul %0, %0, %cst_8 {dimension_numbers = #tpu.dot_dimension_numbers<[2], [2], [1], [1], [0, 0, 0, 1, 1, 1], [0], [0]>} : vector<2x16x3xf32>, vector<2x16x3xf32>, vector<2x16x16xf32> -> vector<2x16x16xf32>
    "tpu.trace_stop"() : () -> ()
    %6 = vector.shape_cast %4 : vector<2x16xf32> to vector<2x16x1xf32>
    %7 = vector.shape_cast %4 : vector<2x16xf32> to vector<2x1x16xf32>
    %8 = vector.broadcast %6 : vector<2x16x1xf32> to vector<2x16x16xf32>
    %9 = vector.broadcast %7 : vector<2x1x16xf32> to vector<2x16x16xf32>
    %10 = arith.addf %8, %9 : vector<2x16x16xf32>
    %cst_9 = arith.constant 2.000000e+00 : f32
    %11 = vector.broadcast %cst_9 : f32 to vector<2x16x16xf32>
    %12 = arith.mulf %11, %5 : vector<2x16x16xf32>
    %13 = arith.subf %10, %12 : vector<2x16x16xf32>
    %cst_10 = arith.constant 0.000000e+00 : f32
    %14 = vector.broadcast %cst_10 : f32 to vector<2x16x16xf32>
    %15 = arith.maximumf %13, %14 : vector<2x16x16xf32>
    %16 = vector.shape_cast %2 : vector<2x16x1xf32> to vector<2x16xf32>
    %cst_11 = arith.constant 2.000000e+00 : f32
    %17 = vector.broadcast %cst_11 : f32 to vector<2x16xf32>
    %18 = arith.mulf %17, %16 : vector<2x16xf32>
    %cst_12 = arith.constant 1.000000e+00 : f32
    %19 = vector.broadcast %cst_12 : f32 to vector<2x16xf32>
    %20 = arith.addf %19, %18 : vector<2x16xf32>
    %21 = tpu.iota {dimensions = array<i32: 1>} : vector<2x16xi32>
    %22 = tpu.iota {dimensions = array<i32: 1>} : vector<2x8x16xi32>
    %cst_13 = arith.constant 1.000000e+30 : f32
    %23 = vector.broadcast %cst_13 : f32 to vector<2x16xf32>
    %cst_14 = arith.constant 0.000000e+00 : f32
    %24 = vector.broadcast %cst_14 : f32 to vector<2x8x16xf32>
    %c0_i32 = arith.constant 0 : i32
    %25 = vector.broadcast %c0_i32 : i32 to vector<2x16xi32>
    %26 = arith.cmpi eq, %21, %25 : vector<2x16xi32>
    %27 = arith.extui %26 : vector<2x16xi1> to vector<2x16xi32>
    %28 = arith.sitofp %27 : vector<2x16xi32> to vector<2x16xf32>
    %29 = vector.shape_cast %28 : vector<2x16xf32> to vector<2x1x16xf32>
    %c0_i32_15 = arith.constant 0 : i32
    %30 = vector.broadcast %c0_i32_15 : i32 to vector<2x8x16xi32>
    %31 = arith.cmpi eq, %22, %30 : vector<2x8x16xi32>
    %32 = vector.shape_cast %29 : vector<2x1x16xf32> to vector<2x1x16xf32>
    %33 = vector.broadcast %32 : vector<2x1x16xf32> to vector<2x8x16xf32>
    %34 = arith.select %31, %33, %24 : vector<2x8x16xi1>, vector<2x8x16xf32>
    "tpu.trace_start"() <{level = 10 : i32, message = "bon,bnm->bom"}> : () -> ()
    %cst_16 = arith.constant dense<0.000000e+00> : vector<2x1x16xf32>
    %35 = tpu.matmul %29, %15, %cst_16 {dimension_numbers = #tpu.dot_dimension_numbers<[2], [1], [1], [2], [0, 0, 0, 1, 1, 2], [0], [0]>} : vector<2x1x16xf32>, vector<2x16x16xf32>, vector<2x1x16xf32> -> vector<2x1x16xf32>
    "tpu.trace_stop"() : () -> ()
    %36 = vector.shape_cast %35 : vector<2x1x16xf32> to vector<2x16xf32>
    %37 = arith.minimumf %23, %36 : vector<2x16xf32>
    %38 = arith.mulf %37, %20 : vector<2x16xf32>
    %cst_17 = arith.constant dense<0xFF800000> : vector<2xf32>
    %39 = vector.multi_reduction <maximumf>, %38, %cst_17 [1] : vector<2x16xf32> to vector<2xf32>
    %40 = vector.shape_cast %39 : vector<2xf32> to vector<2x1xf32>
    %41 = vector.broadcast %40 : vector<2x1xf32> to vector<2x16xf32>
    %42 = arith.cmpf oeq, %38, %41 : vector<2x16xf32>
    %c16_i32 = arith.constant 16 : i32
    %43 = vector.broadcast %c16_i32 : i32 to vector<2x16xi32>
    %44 = arith.select %42, %21, %43 : vector<2x16xi1>, vector<2x16xi32>
    %cst_18 = arith.constant dense<2147483647> : vector<2xi32>
    %45 = vector.multi_reduction <minsi>, %44, %cst_18 [1] : vector<2x16xi32> to vector<2xi32>
    %46 = vector.shape_cast %45 : vector<2xi32> to vector<2x1xi32>
    %47 = vector.broadcast %46 : vector<2x1xi32> to vector<2x16xi32>
    %48 = arith.cmpi eq, %21, %47 : vector<2x16xi32>
    %49 = arith.extui %48 : vector<2x16xi1> to vector<2x16xi32>
    %50 = arith.sitofp %49 : vector<2x16xi32> to vector<2x16xf32>
    %51 = vector.shape_cast %50 : vector<2x16xf32> to vector<2x1x16xf32>
    %c1_i32 = arith.constant 1 : i32
    %52 = vector.broadcast %c1_i32 : i32 to vector<2x8x16xi32>
    %53 = arith.cmpi eq, %22, %52 : vector<2x8x16xi32>
    %54 = vector.shape_cast %51 : vector<2x1x16xf32> to vector<2x1x16xf32>
    %55 = vector.broadcast %54 : vector<2x1x16xf32> to vector<2x8x16xf32>
    %56 = arith.select %53, %55, %34 : vector<2x8x16xi1>, vector<2x8x16xf32>
    "tpu.trace_start"() <{level = 10 : i32, message = "bon,bnm->bom"}> : () -> ()
    %cst_19 = arith.constant dense<0.000000e+00> : vector<2x1x16xf32>
    %57 = tpu.matmul %51, %15, %cst_19 {dimension_numbers = #tpu.dot_dimension_numbers<[2], [1], [1], [2], [0, 0, 0, 1, 1, 2], [0], [0]>} : vector<2x1x16xf32>, vector<2x16x16xf32>, vector<2x1x16xf32> -> vector<2x1x16xf32>
    "tpu.trace_stop"() : () -> ()
    %58 = vector.shape_cast %57 : vector<2x1x16xf32> to vector<2x16xf32>
    %59 = arith.minimumf %37, %58 : vector<2x16xf32>
    %60 = arith.mulf %59, %20 : vector<2x16xf32>
    %cst_20 = arith.constant dense<0xFF800000> : vector<2xf32>
    %61 = vector.multi_reduction <maximumf>, %60, %cst_20 [1] : vector<2x16xf32> to vector<2xf32>
    %62 = vector.shape_cast %61 : vector<2xf32> to vector<2x1xf32>
    %63 = vector.broadcast %62 : vector<2x1xf32> to vector<2x16xf32>
    %64 = arith.cmpf oeq, %60, %63 : vector<2x16xf32>
    %c16_i32_21 = arith.constant 16 : i32
    %65 = vector.broadcast %c16_i32_21 : i32 to vector<2x16xi32>
    %66 = arith.select %64, %21, %65 : vector<2x16xi1>, vector<2x16xi32>
    %cst_22 = arith.constant dense<2147483647> : vector<2xi32>
    %67 = vector.multi_reduction <minsi>, %66, %cst_22 [1] : vector<2x16xi32> to vector<2xi32>
    %68 = vector.shape_cast %67 : vector<2xi32> to vector<2x1xi32>
    %69 = vector.broadcast %68 : vector<2x1xi32> to vector<2x16xi32>
    %70 = arith.cmpi eq, %21, %69 : vector<2x16xi32>
    %71 = arith.extui %70 : vector<2x16xi1> to vector<2x16xi32>
    %72 = arith.sitofp %71 : vector<2x16xi32> to vector<2x16xf32>
    %73 = vector.shape_cast %72 : vector<2x16xf32> to vector<2x1x16xf32>
    %c2_i32 = arith.constant 2 : i32
    %74 = vector.broadcast %c2_i32 : i32 to vector<2x8x16xi32>
    %75 = arith.cmpi eq, %22, %74 : vector<2x8x16xi32>
    %76 = vector.shape_cast %73 : vector<2x1x16xf32> to vector<2x1x16xf32>
    %77 = vector.broadcast %76 : vector<2x1x16xf32> to vector<2x8x16xf32>
    %78 = arith.select %75, %77, %56 : vector<2x8x16xi1>, vector<2x8x16xf32>
    "tpu.trace_start"() <{level = 10 : i32, message = "bon,bnm->bom"}> : () -> ()
    %cst_23 = arith.constant dense<0.000000e+00> : vector<2x1x16xf32>
    %79 = tpu.matmul %73, %15, %cst_23 {dimension_numbers = #tpu.dot_dimension_numbers<[2], [1], [1], [2], [0, 0, 0, 1, 1, 2], [0], [0]>} : vector<2x1x16xf32>, vector<2x16x16xf32>, vector<2x1x16xf32> -> vector<2x1x16xf32>
    "tpu.trace_stop"() : () -> ()
    %80 = vector.shape_cast %79 : vector<2x1x16xf32> to vector<2x16xf32>
    %81 = arith.minimumf %59, %80 : vector<2x16xf32>
    %82 = arith.mulf %81, %20 : vector<2x16xf32>
    %cst_24 = arith.constant dense<0xFF800000> : vector<2xf32>
    %83 = vector.multi_reduction <maximumf>, %82, %cst_24 [1] : vector<2x16xf32> to vector<2xf32>
    %84 = vector.shape_cast %83 : vector<2xf32> to vector<2x1xf32>
    %85 = vector.broadcast %84 : vector<2x1xf32> to vector<2x16xf32>
    %86 = arith.cmpf oeq, %82, %85 : vector<2x16xf32>
    %c16_i32_25 = arith.constant 16 : i32
    %87 = vector.broadcast %c16_i32_25 : i32 to vector<2x16xi32>
    %88 = arith.select %86, %21, %87 : vector<2x16xi1>, vector<2x16xi32>
    %cst_26 = arith.constant dense<2147483647> : vector<2xi32>
    %89 = vector.multi_reduction <minsi>, %88, %cst_26 [1] : vector<2x16xi32> to vector<2xi32>
    %90 = vector.shape_cast %89 : vector<2xi32> to vector<2x1xi32>
    %91 = vector.broadcast %90 : vector<2x1xi32> to vector<2x16xi32>
    %92 = arith.cmpi eq, %21, %91 : vector<2x16xi32>
    %93 = arith.extui %92 : vector<2x16xi1> to vector<2x16xi32>
    %94 = arith.sitofp %93 : vector<2x16xi32> to vector<2x16xf32>
    %95 = vector.shape_cast %94 : vector<2x16xf32> to vector<2x1x16xf32>
    %c3_i32 = arith.constant 3 : i32
    %96 = vector.broadcast %c3_i32 : i32 to vector<2x8x16xi32>
    %97 = arith.cmpi eq, %22, %96 : vector<2x8x16xi32>
    %98 = vector.shape_cast %95 : vector<2x1x16xf32> to vector<2x1x16xf32>
    %99 = vector.broadcast %98 : vector<2x1x16xf32> to vector<2x8x16xf32>
    %100 = arith.select %97, %99, %78 : vector<2x8x16xi1>, vector<2x8x16xf32>
    "tpu.trace_start"() <{level = 10 : i32, message = "bon,bnm->bom"}> : () -> ()
    %cst_27 = arith.constant dense<0.000000e+00> : vector<2x1x16xf32>
    %101 = tpu.matmul %95, %15, %cst_27 {dimension_numbers = #tpu.dot_dimension_numbers<[2], [1], [1], [2], [0, 0, 0, 1, 1, 2], [0], [0]>} : vector<2x1x16xf32>, vector<2x16x16xf32>, vector<2x1x16xf32> -> vector<2x1x16xf32>
    "tpu.trace_stop"() : () -> ()
    %102 = vector.shape_cast %101 : vector<2x1x16xf32> to vector<2x16xf32>
    %103 = arith.minimumf %81, %102 : vector<2x16xf32>
    %104 = arith.mulf %103, %20 : vector<2x16xf32>
    %cst_28 = arith.constant dense<0xFF800000> : vector<2xf32>
    %105 = vector.multi_reduction <maximumf>, %104, %cst_28 [1] : vector<2x16xf32> to vector<2xf32>
    %106 = vector.shape_cast %105 : vector<2xf32> to vector<2x1xf32>
    %107 = vector.broadcast %106 : vector<2x1xf32> to vector<2x16xf32>
    %108 = arith.cmpf oeq, %104, %107 : vector<2x16xf32>
    %c16_i32_29 = arith.constant 16 : i32
    %109 = vector.broadcast %c16_i32_29 : i32 to vector<2x16xi32>
    %110 = arith.select %108, %21, %109 : vector<2x16xi1>, vector<2x16xi32>
    %cst_30 = arith.constant dense<2147483647> : vector<2xi32>
    %111 = vector.multi_reduction <minsi>, %110, %cst_30 [1] : vector<2x16xi32> to vector<2xi32>
    %112 = vector.shape_cast %111 : vector<2xi32> to vector<2x1xi32>
    %113 = vector.broadcast %112 : vector<2x1xi32> to vector<2x16xi32>
    %114 = arith.cmpi eq, %21, %113 : vector<2x16xi32>
    %115 = arith.extui %114 : vector<2x16xi1> to vector<2x16xi32>
    %116 = arith.sitofp %115 : vector<2x16xi32> to vector<2x16xf32>
    %117 = vector.shape_cast %116 : vector<2x16xf32> to vector<2x1x16xf32>
    %c4_i32 = arith.constant 4 : i32
    %118 = vector.broadcast %c4_i32 : i32 to vector<2x8x16xi32>
    %119 = arith.cmpi eq, %22, %118 : vector<2x8x16xi32>
    %120 = vector.shape_cast %117 : vector<2x1x16xf32> to vector<2x1x16xf32>
    %121 = vector.broadcast %120 : vector<2x1x16xf32> to vector<2x8x16xf32>
    %122 = arith.select %119, %121, %100 : vector<2x8x16xi1>, vector<2x8x16xf32>
    "tpu.trace_start"() <{level = 10 : i32, message = "bon,bnm->bom"}> : () -> ()
    %cst_31 = arith.constant dense<0.000000e+00> : vector<2x1x16xf32>
    %123 = tpu.matmul %117, %15, %cst_31 {dimension_numbers = #tpu.dot_dimension_numbers<[2], [1], [1], [2], [0, 0, 0, 1, 1, 2], [0], [0]>} : vector<2x1x16xf32>, vector<2x16x16xf32>, vector<2x1x16xf32> -> vector<2x1x16xf32>
    "tpu.trace_stop"() : () -> ()
    %124 = vector.shape_cast %123 : vector<2x1x16xf32> to vector<2x16xf32>
    %125 = arith.minimumf %103, %124 : vector<2x16xf32>
    %126 = arith.mulf %125, %20 : vector<2x16xf32>
    %cst_32 = arith.constant dense<0xFF800000> : vector<2xf32>
    %127 = vector.multi_reduction <maximumf>, %126, %cst_32 [1] : vector<2x16xf32> to vector<2xf32>
    %128 = vector.shape_cast %127 : vector<2xf32> to vector<2x1xf32>
    %129 = vector.broadcast %128 : vector<2x1xf32> to vector<2x16xf32>
    %130 = arith.cmpf oeq, %126, %129 : vector<2x16xf32>
    %c16_i32_33 = arith.constant 16 : i32
    %131 = vector.broadcast %c16_i32_33 : i32 to vector<2x16xi32>
    %132 = arith.select %130, %21, %131 : vector<2x16xi1>, vector<2x16xi32>
    %cst_34 = arith.constant dense<2147483647> : vector<2xi32>
    %133 = vector.multi_reduction <minsi>, %132, %cst_34 [1] : vector<2x16xi32> to vector<2xi32>
    %134 = vector.shape_cast %133 : vector<2xi32> to vector<2x1xi32>
    %135 = vector.broadcast %134 : vector<2x1xi32> to vector<2x16xi32>
    %136 = arith.cmpi eq, %21, %135 : vector<2x16xi32>
    %137 = arith.extui %136 : vector<2x16xi1> to vector<2x16xi32>
    %138 = arith.sitofp %137 : vector<2x16xi32> to vector<2x16xf32>
    %139 = vector.shape_cast %138 : vector<2x16xf32> to vector<2x1x16xf32>
    %c5_i32 = arith.constant 5 : i32
    %140 = vector.broadcast %c5_i32 : i32 to vector<2x8x16xi32>
    %141 = arith.cmpi eq, %22, %140 : vector<2x8x16xi32>
    %142 = vector.shape_cast %139 : vector<2x1x16xf32> to vector<2x1x16xf32>
    %143 = vector.broadcast %142 : vector<2x1x16xf32> to vector<2x8x16xf32>
    %144 = arith.select %141, %143, %122 : vector<2x8x16xi1>, vector<2x8x16xf32>
    "tpu.trace_start"() <{level = 10 : i32, message = "bon,bnm->bom"}> : () -> ()
    %cst_35 = arith.constant dense<0.000000e+00> : vector<2x1x16xf32>
    %145 = tpu.matmul %139, %15, %cst_35 {dimension_numbers = #tpu.dot_dimension_numbers<[2], [1], [1], [2], [0, 0, 0, 1, 1, 2], [0], [0]>} : vector<2x1x16xf32>, vector<2x16x16xf32>, vector<2x1x16xf32> -> vector<2x1x16xf32>
    "tpu.trace_stop"() : () -> ()
    %146 = vector.shape_cast %145 : vector<2x1x16xf32> to vector<2x16xf32>
    %147 = arith.minimumf %125, %146 : vector<2x16xf32>
    %148 = arith.mulf %147, %20 : vector<2x16xf32>
    %cst_36 = arith.constant dense<0xFF800000> : vector<2xf32>
    %149 = vector.multi_reduction <maximumf>, %148, %cst_36 [1] : vector<2x16xf32> to vector<2xf32>
    %150 = vector.shape_cast %149 : vector<2xf32> to vector<2x1xf32>
    %151 = vector.broadcast %150 : vector<2x1xf32> to vector<2x16xf32>
    %152 = arith.cmpf oeq, %148, %151 : vector<2x16xf32>
    %c16_i32_37 = arith.constant 16 : i32
    %153 = vector.broadcast %c16_i32_37 : i32 to vector<2x16xi32>
    %154 = arith.select %152, %21, %153 : vector<2x16xi1>, vector<2x16xi32>
    %cst_38 = arith.constant dense<2147483647> : vector<2xi32>
    %155 = vector.multi_reduction <minsi>, %154, %cst_38 [1] : vector<2x16xi32> to vector<2xi32>
    %156 = vector.shape_cast %155 : vector<2xi32> to vector<2x1xi32>
    %157 = vector.broadcast %156 : vector<2x1xi32> to vector<2x16xi32>
    %158 = arith.cmpi eq, %21, %157 : vector<2x16xi32>
    %159 = arith.extui %158 : vector<2x16xi1> to vector<2x16xi32>
    %160 = arith.sitofp %159 : vector<2x16xi32> to vector<2x16xf32>
    %161 = vector.shape_cast %160 : vector<2x16xf32> to vector<2x1x16xf32>
    %c6_i32 = arith.constant 6 : i32
    %162 = vector.broadcast %c6_i32 : i32 to vector<2x8x16xi32>
    %163 = arith.cmpi eq, %22, %162 : vector<2x8x16xi32>
    %164 = vector.shape_cast %161 : vector<2x1x16xf32> to vector<2x1x16xf32>
    %165 = vector.broadcast %164 : vector<2x1x16xf32> to vector<2x8x16xf32>
    %166 = arith.select %163, %165, %144 : vector<2x8x16xi1>, vector<2x8x16xf32>
    "tpu.trace_start"() <{level = 10 : i32, message = "bon,bnm->bom"}> : () -> ()
    %cst_39 = arith.constant dense<0.000000e+00> : vector<2x1x16xf32>
    %167 = tpu.matmul %161, %15, %cst_39 {dimension_numbers = #tpu.dot_dimension_numbers<[2], [1], [1], [2], [0, 0, 0, 1, 1, 2], [0], [0]>} : vector<2x1x16xf32>, vector<2x16x16xf32>, vector<2x1x16xf32> -> vector<2x1x16xf32>
    "tpu.trace_stop"() : () -> ()
    %168 = vector.shape_cast %167 : vector<2x1x16xf32> to vector<2x16xf32>
    %169 = arith.minimumf %147, %168 : vector<2x16xf32>
    %170 = arith.mulf %169, %20 : vector<2x16xf32>
    %cst_40 = arith.constant dense<0xFF800000> : vector<2xf32>
    %171 = vector.multi_reduction <maximumf>, %170, %cst_40 [1] : vector<2x16xf32> to vector<2xf32>
    %172 = vector.shape_cast %171 : vector<2xf32> to vector<2x1xf32>
    %173 = vector.broadcast %172 : vector<2x1xf32> to vector<2x16xf32>
    %174 = arith.cmpf oeq, %170, %173 : vector<2x16xf32>
    %c16_i32_41 = arith.constant 16 : i32
    %175 = vector.broadcast %c16_i32_41 : i32 to vector<2x16xi32>
    %176 = arith.select %174, %21, %175 : vector<2x16xi1>, vector<2x16xi32>
    %cst_42 = arith.constant dense<2147483647> : vector<2xi32>
    %177 = vector.multi_reduction <minsi>, %176, %cst_42 [1] : vector<2x16xi32> to vector<2xi32>
    %178 = vector.shape_cast %177 : vector<2xi32> to vector<2x1xi32>
    %179 = vector.broadcast %178 : vector<2x1xi32> to vector<2x16xi32>
    %180 = arith.cmpi eq, %21, %179 : vector<2x16xi32>
    %181 = arith.extui %180 : vector<2x16xi1> to vector<2x16xi32>
    %182 = arith.sitofp %181 : vector<2x16xi32> to vector<2x16xf32>
    %183 = vector.shape_cast %182 : vector<2x16xf32> to vector<2x1x16xf32>
    %c7_i32 = arith.constant 7 : i32
    %184 = vector.broadcast %c7_i32 : i32 to vector<2x8x16xi32>
    %185 = arith.cmpi eq, %22, %184 : vector<2x8x16xi32>
    %186 = vector.shape_cast %183 : vector<2x1x16xf32> to vector<2x1x16xf32>
    %187 = vector.broadcast %186 : vector<2x1x16xf32> to vector<2x8x16xf32>
    %188 = arith.select %185, %187, %166 : vector<2x8x16xi1>, vector<2x8x16xf32>
    "tpu.trace_start"() <{level = 10 : i32, message = "bon,bnm->bom"}> : () -> ()
    %cst_43 = arith.constant dense<0.000000e+00> : vector<2x1x16xf32>
    %189 = tpu.matmul %183, %15, %cst_43 {dimension_numbers = #tpu.dot_dimension_numbers<[2], [1], [1], [2], [0, 0, 0, 1, 1, 2], [0], [0]>} : vector<2x1x16xf32>, vector<2x16x16xf32>, vector<2x1x16xf32> -> vector<2x1x16xf32>
    "tpu.trace_stop"() : () -> ()
    %190 = vector.shape_cast %189 : vector<2x1x16xf32> to vector<2x16xf32>
    %191 = arith.minimumf %169, %190 : vector<2x16xf32>
    %192 = arith.mulf %191, %20 : vector<2x16xf32>
    %cst_44 = arith.constant dense<0xFF800000> : vector<2xf32>
    %193 = vector.multi_reduction <maximumf>, %192, %cst_44 [1] : vector<2x16xf32> to vector<2xf32>
    %194 = vector.shape_cast %193 : vector<2xf32> to vector<2x1xf32>
    %195 = vector.broadcast %194 : vector<2x1xf32> to vector<2x16xf32>
    %196 = arith.cmpf oeq, %192, %195 : vector<2x16xf32>
    %c16_i32_45 = arith.constant 16 : i32
    %197 = vector.broadcast %c16_i32_45 : i32 to vector<2x16xi32>
    %198 = arith.select %196, %21, %197 : vector<2x16xi1>, vector<2x16xi32>
    %cst_46 = arith.constant dense<2147483647> : vector<2xi32>
    %199 = vector.multi_reduction <minsi>, %198, %cst_46 [1] : vector<2x16xi32> to vector<2xi32>
    %200 = vector.shape_cast %199 : vector<2xi32> to vector<2x1xi32>
    %201 = vector.broadcast %200 : vector<2x1xi32> to vector<2x16xi32>
    %202 = arith.cmpi eq, %21, %201 : vector<2x16xi32>
    %203 = arith.extui %202 : vector<2x16xi1> to vector<2x16xi32>
    %204 = arith.sitofp %203 : vector<2x16xi32> to vector<2x16xf32>
    %205 = vector.shape_cast %204 : vector<2x16xf32> to vector<2x1x16xf32>
    %c8_i32 = arith.constant 8 : i32
    "tpu.trace_start"() <{level = 10 : i32, message = "bmn,bnd->bmd"}> : () -> ()
    %cst_47 = arith.constant dense<0.000000e+00> : vector<2x8x3xf32>
    %206 = tpu.matmul %188, %0, %cst_47 {dimension_numbers = #tpu.dot_dimension_numbers<[2], [1], [1], [2], [0, 0, 0, 1, 1, 2], [0], [0]>} : vector<2x8x16xf32>, vector<2x16x3xf32>, vector<2x8x3xf32> -> vector<2x8x3xf32>
    %cst_48 = arith.constant dense<0.000000e+00> : vector<2x8x1xf32>
    %207 = tpu.matmul %188, %2, %cst_48 {dimension_numbers = #tpu.dot_dimension_numbers<[2], [1], [1], [2], [0, 0, 0, 1, 1, 2], [0], [0]>} : vector<2x8x16xf32>, vector<2x16x1xf32>, vector<2x8x1xf32> -> vector<2x8x1xf32>
    "tpu.trace_stop"() : () -> ()
    %208 = vector.shape_cast %0 : vector<2x16x3xf32> to vector<2x1x16x3xf32>
    %209 = vector.shape_cast %206 : vector<2x8x3xf32> to vector<2x8x1x3xf32>
    %210 = vector.broadcast %208 : vector<2x1x16x3xf32> to vector<2x8x16x3xf32>
    %211 = vector.broadcast %209 : vector<2x8x1x3xf32> to vector<2x8x16x3xf32>
    %212 = arith.subf %210, %211 : vector<2x8x16x3xf32>
    %213 = arith.mulf %212, %212 : vector<2x8x16x3xf32>
    %cst_49 = arith.constant dense<0.000000e+00> : vector<2x8x16xf32>
    %214 = vector.multi_reduction <add>, %213, %cst_49 [3] : vector<2x8x16x3xf32> to vector<2x8x16xf32>
    %cst_50 = arith.constant 2.500000e-01 : f32
    %215 = vector.broadcast %cst_50 : f32 to vector<2x8x16xf32>
    %216 = arith.cmpf ole, %214, %215 : vector<2x8x16xf32>
    %217 = vector.shape_cast %1 : vector<2x16x4xf32> to vector<32x4xf32>
    %c0_51 = arith.constant 0 : index
    %c0_52 = arith.constant 0 : index
    %218 = vector.load %arg3[%c0_51, %c0_52] : memref<4x32xf32, #tpu.memory_space<vmem>>, vector<4x32xf32>
    %cst_53 = arith.constant dense<0.000000e+00> : vector<32x32xf32>
    %219 = tpu.matmul %217, %218, %cst_53 {dimension_numbers = #tpu.dot_dimension_numbers<[1], [0], [0], [1], [0, 0, 1, 1], [], []>} : vector<32x4xf32>, vector<4x32xf32>, vector<32x32xf32> -> vector<32x32xf32>
    %220 = vector.shape_cast %212 : vector<2x8x16x3xf32> to vector<256x3xf32>
    %c0_54 = arith.constant 0 : index
    %c0_55 = arith.constant 0 : index
    %221 = vector.load %arg4[%c0_54, %c0_55] : memref<3x32xf32, #tpu.memory_space<vmem>>, vector<3x32xf32>
    %cst_56 = arith.constant dense<0.000000e+00> : vector<256x32xf32>
    %222 = tpu.matmul %220, %221, %cst_56 {dimension_numbers = #tpu.dot_dimension_numbers<[1], [0], [0], [1], [0, 0, 1, 1], [], []>} : vector<256x3xf32>, vector<3x32xf32>, vector<256x32xf32> -> vector<256x32xf32>
    %223 = vector.shape_cast %219 : vector<32x32xf32> to vector<2x1x16x32xf32>
    %224 = vector.shape_cast %222 : vector<256x32xf32> to vector<2x8x16x32xf32>
    %225 = vector.broadcast %223 : vector<2x1x16x32xf32> to vector<2x8x16x32xf32>
    %226 = arith.addf %225, %224 : vector<2x8x16x32xf32>
    %c0_57 = arith.constant 0 : index
    %c0_58 = arith.constant 0 : index
    %227 = vector.load %arg5[%c0_57, %c0_58] : memref<1x32xf32, #tpu.memory_space<vmem>>, vector<1x32xf32>
    %228 = vector.shape_cast %227 : vector<1x32xf32> to vector<1x1x1x32xf32>
    %229 = vector.broadcast %228 : vector<1x1x1x32xf32> to vector<2x8x16x32xf32>
    %230 = arith.addf %226, %229 : vector<2x8x16x32xf32>
    %cst_59 = arith.constant 0.000000e+00 : f32
    %231 = vector.broadcast %cst_59 : f32 to vector<2x8x16x32xf32>
    %232 = arith.maximumf %230, %231 : vector<2x8x16x32xf32>
    %233 = vector.shape_cast %232 : vector<2x8x16x32xf32> to vector<256x32xf32>
    %c0_60 = arith.constant 0 : index
    %c0_61 = arith.constant 0 : index
    %234 = vector.load %arg6[%c0_60, %c0_61] : memref<32x32xf32, #tpu.memory_space<vmem>>, vector<32x32xf32>
    %cst_62 = arith.constant dense<0.000000e+00> : vector<256x32xf32>
    %235 = tpu.matmul %233, %234, %cst_62 {dimension_numbers = #tpu.dot_dimension_numbers<[1], [0], [0], [1], [0, 0, 1, 1], [], []>} : vector<256x32xf32>, vector<32x32xf32>, vector<256x32xf32> -> vector<256x32xf32>
    %c0_63 = arith.constant 0 : index
    %c0_64 = arith.constant 0 : index
    %236 = vector.load %arg7[%c0_63, %c0_64] : memref<1x32xf32, #tpu.memory_space<vmem>>, vector<1x32xf32>
    %237 = vector.broadcast %236 : vector<1x32xf32> to vector<256x32xf32>
    %238 = arith.addf %235, %237 : vector<256x32xf32>
    %cst_65 = arith.constant 0.000000e+00 : f32
    %239 = vector.broadcast %cst_65 : f32 to vector<256x32xf32>
    %240 = arith.maximumf %238, %239 : vector<256x32xf32>
    %241 = vector.shape_cast %240 : vector<256x32xf32> to vector<2x8x16x32xf32>
    %242 = vector.shape_cast %216 : vector<2x8x16xi1> to vector<2x8x16x1xi1>
    %cst_66 = arith.constant -1.000000e+30 : f32
    %243 = vector.shape_cast %242 : vector<2x8x16x1xi1> to vector<2x8x16x1xi1>
    %244 = vector.broadcast %243 : vector<2x8x16x1xi1> to vector<2x8x16x32xi1>
    %245 = vector.broadcast %cst_66 : f32 to vector<2x8x16x32xf32>
    %246 = arith.select %244, %241, %245 : vector<2x8x16x32xi1>, vector<2x8x16x32xf32>
    %cst_67 = arith.constant dense<0xFF800000> : vector<2x8x32xf32>
    %247 = vector.multi_reduction <maximumf>, %246, %cst_67 [2] : vector<2x8x16x32xf32> to vector<2x8x32xf32>
    %248 = vector.shape_cast %247 : vector<2x8x32xf32> to vector<16x32xf32>
    %c0_68 = arith.constant 0 : index
    %c0_69 = arith.constant 0 : index
    %249 = vector.load %arg8[%c0_68, %c0_69] : memref<16x32xf32, #tpu.memory_space<vmem>>, vector<16x32xf32>
    tpu.vector_store %arg8[%c0_68, %c0_69], %248 {strides = array<i32>} : memref<16x32xf32, #tpu.memory_space<vmem>>, vector<16x32xf32>,
    %c0_70 = arith.constant 0 : index
    %c0_71 = arith.constant 0 : index
    %c0_72 = arith.constant 0 : index
    %250 = vector.load %arg9[%c0_70, %c0_71, %c0_72] : memref<2x8x3xf32, #tpu.memory_space<vmem>>, vector<2x8x3xf32>
    tpu.vector_store %arg9[%c0_70, %c0_71, %c0_72], %206 {strides = array<i32>} : memref<2x8x3xf32, #tpu.memory_space<vmem>>, vector<2x8x3xf32>,
    %c0_73 = arith.constant 0 : index
    %c0_74 = arith.constant 0 : index
    %c0_75 = arith.constant 0 : index
    %251 = vector.load %arg10[%c0_73, %c0_74, %c0_75] : memref<2x8x1xf32, #tpu.memory_space<vmem>>, vector<2x8x1xf32>
    tpu.vector_store %arg10[%c0_73, %c0_74, %c0_75], %207 {strides = array<i32>} : memref<2x8x1xf32, #tpu.memory_space<vmem>>, vector<2x8x1xf32>,
    return
  }
}

</mosaic_0001>

<bundles_post_ra>
// kernel: sa_module_forward.1
= control target key start
LH: loop header
LB: loop body
LE: loop exit
PB: predicated region body
PF: predicated region fallthrough
CT: control target
= control target key end

     0   :  { %vm49_vm0 = vcmask 23552   ;;  %s3116_s0 = inlined_call_operand.vmem [shape: f32[2,16,4], index: 0, kind: input, shape index: {}]   ;;  %s3117_s1 = inlined_call_operand.vmem [shape: f32[2,16,3], index: 1, kind: input, shape index: {}]   ;;  %s3118_s2 = inlined_call_operand.vmem [shape: f32[2,16,1], index: 2, kind: input, shape index: {}]   ;;  %s3119_s3 = inlined_call_operand.vmem [shape: f32[4,32], index: 3, kind: input, shape index: {}]   ;;  %s3120_s4 = inlined_call_operand.vmem [shape: f32[3,32], index: 4, kind: input, shape index: {}]   ;;  %s3121_s5 = inlined_call_operand.vmem [shape: f32[1,32], index: 5, kind: input, shape index: {}]   ;;  %s3122_s6 = inlined_call_operand.vmem [shape: f32[32,32], index: 6, kind: input, shape index: {}]   ;;  %s3123_s7 = inlined_call_operand.vmem [shape: f32[1,32], index: 7, kind: input, shape index: {}]   ;;  %s3124_s8 = inlined_call_operand.hbm [shape: f32[16,32], index: 8, kind: output, shape index: {0}]   ;;  %s3125_s9 = inlined_call_operand.vmem [shape: f32[2,8,3], index: 9, kind: output, shape index: {1}]   ;;  %s3126_s10 = inlined_call_operand.vmem [shape: f32[2,8,1], index: 10, kind: output, shape index: {2}]  }
   0x1   :  { %v2326_v0 = vld [vmem:[%s3117_s1 + $0x8] sm:$0xff]  ;;  %v2331_v1 = vld [vmem:[%s3117_s1 + $0x18] sm:$0xff]  ;;  %v2336_v2 = vld [vmem:[%s3117_s1 + $0x10] sm:$0xff] }
   0x2   :  { %2216 = vmatpush.xpose.msk.msra.mxu3 %vm49_vm0, %v2326_v0  ;;  %2116 = vmatpush.xpose.msk.msra.mxu1 %vm49_vm0, %v2331_v1  ;;  %v47_v3 = vmul.f32 %v2336_v2, %v2336_v2  ;;  %v2347_v4 = vld [vmem:[%s3117_s1] sm:$0xff] }
   0x3   :  { %2112 = vmatpush.xpose.msk.msra.mxu0 %vm49_vm0, %v2326_v0  ;;  %v45_v5 = vmul.f32 %v2347_v4, %v2347_v4 }
   0x4   :  { %16 = vsyncpa [#allocation3], 0  ;;  %v56_v6 = vsel %vm49_vm0, %v47_v3, 0.0  ;;  %v48_v8 = vmul.f32 %v2331_v1, %v2331_v1  ;;  %v46_v9 = vmul.f32 %v2326_v0, %v2326_v0  ;;  %v124_v12 = vlaneseq  ;;  %v2381_v16 = vld [vmem:[%s3118_s2] sm:$0xff]  ;;  %v2386_v17 = vld [vmem:[%s3118_s2 + $0x8] sm:$0xff]  ;;  %s2266_s20 = smov 128  }
   0x5   :  { %57 = vadd.xlane.f32.xlu0 %v56_v6  ;;  %v50_v7 = vsel %vm49_vm0, %v45_v5, 0.0  ;;  %v2391_v18 = vld [vmem:[%s3118_s2 + $0x10] sm:$0xff]  ;;  %v2263_v19 = vmov 0   ;;  %v171_v20 = vmul.f32 2.0, %v2381_v16  ;;  %v172_v21 = vmul.f32 2.0, %v2386_v17  ;;  %v2402_v28 = vld [vmem:[%s3118_s2 + $0x18] sm:$0xff] }
   0x6   :  { %2217 = vmatpush.xpose.msk.msra.mxu3 %vm49_vm0, %v2347_v4  ;;  %2117 = vmatpush.xpose.msk.msra.mxu1 %vm49_vm0, %v2336_v2  ;;  %v59_v10 = vsel %vm49_vm0, %v48_v8, 0.0  ;;  %v53_v11 = vsel %vm49_vm0, %v46_v9, 0.0  ;;  %v2376_v15 = vand.u32 127, %v124_v12  ;;  %v173_v22 = vmul.f32 2.0, %v2391_v18 }
   0x7   :  { %2113 = vmatpush.xpose.msk.msra.mxu0 %vm49_vm0, %v2347_v4  ;;  %51 = vadd.xlane.f32.xlu1 %v50_v7  ;;  %v175_v25 = vadd.f32 1.0, %v171_v20  ;;  %v176_v26 = vadd.f32 1.0, %v172_v21  ;;  %v174_v31 = vmul.f32 2.0, %v2402_v28  ;;  %vm129_vm1 = vcmask 130112  }
   0x8   :  { %2230 = vset.pattern.permute.xlu1 %v2263_v19  ;;  %2229 = vset.pattern.permute.xlu0 %v2263_v19  ;;  %v2397_v23 = vadd.s32 4294967288, %v2376_v15  ;;  %v177_v27 = vadd.f32 1.0, %v173_v22  ;;  %vm181_vm2 = vcmp.eq.s32.totalorder %v2376_v15, 0  ;;  %v2264_v55 = vmov 0.0  }
   0x9   :  { %2115 = vmatmul.msk.f32.vlgmr.msra.gmra.mxu3 %vm49_vm0, %v2326_v0  ;;  %2118 = vmatmul.msk.f32.vlgmr.msra.gmra.mxu1 %vm49_vm0, %v2336_v2  ;;  %v178_v38 = vadd.f32 1.0, %v174_v31  ;;  %v2415_v56 = vsel %vm181_vm2, 1.0, %v2264_v55  ;;  %vm193_vm3 = vcmask 130048   ;;  %vm134_vm4 = vcmask 1041409  }
   0xa   :  { %2114 = vmatmul.msk.f32.vlgmr.msra.gmra.mxu0 %vm49_vm0, %v2347_v4  ;;  %2228 = vset.pattern.permute.xlu2 %v2263_v19  ;;  %v185_v59 = vrot.slane %v2415_v56, 1  ;;  %vm271_vm5 = vcmask 123904  }
   0xb   :  { %251 = vperm.xlu2 %2228, %v177_v27  }
   0xd   :  { %60 = vadd.xlane.f32.xlu0 %v59_v10 }
   0xf   :  { %54 = vadd.xlane.f32.xlu1 %v53_v11 }
  0x11   :  { %2119 = vmatmul.msk.f32.gmra.mxu1 %vm49_vm0, %v2331_v1 }
  0x13   :  { %254 = vperm.xlu2 %2228, %v178_v38  }
  0x21   :  { %245 = vperm.xlu0 %2229, %v175_v25  }
  0x28   :  { %248 = vperm.xlu1 %2230, %v176_v26  }
  0x65   :  { %v252_v61 = vpop.permute.xlu2 %251 }
  0x66   :  { %v259_v5 = vperm.slane %v252_v61, %v2376_v15 }
  0x6d   :  { %v255_v62 = vpop.permute.xlu2 %254 }
  0x6e   :  { %v260_v6 = vperm.slane %v255_v62, %v2397_v23 }
  0x70   :  { %v2454_v11 = vsel %vm129_vm1, %v260_v6, %v259_v5 }
  0x78   :  { %v58_v14 = vpop.xlane.xlu0 %57 }
  0x79   :  { %v131_v36 = vperm.slane %v58_v14, %v2376_v15 }
  0x7a   :  { %v52_v13 = vpop.xlane.xlu1 %51 }
  0x7b   :  { %v126_v29 = vperm.slane %v52_v13, %v2376_v15 }
  0x80   :  { %v61_v32 = vpop.xlane.xlu0 %60 }
  0x81   :  { %v132_v37 = vperm.slane %v61_v32, %v2397_v23 }
  0x82   :  { %v55_v24 = vpop.xlane.xlu1 %54 }
  0x83   :  { %v128_v30 = vperm.slane %v55_v24, %v2397_v23  ;;  %v133_v42 = vsel %vm129_vm1, %v132_v37, %v131_v36 }
  0x84   :  { %v158_v47 = vadd.f32 %v133_v42, %v61_v32  ;;  %v157_v51 = vadd.f32 %v133_v42, %v58_v14 }
  0x85   :  { %v130_v34 = vsel %vm129_vm1, %v128_v30, %v126_v29 }
  0x86   :  { %v114_v33 = vpop.f32.mrf.mxu1  ;;  %v155_v39 = vadd.f32 %v130_v34, %v52_v13  ;;  %v156_v43 = vadd.f32 %v130_v34, %v55_v24 }
  0x87   :  { %v85_v35 = vpop.f32.mrf.mxu0  ;;  %v161_v45 = vmul.f32 2.0, %v114_v33 }
  0x88   :  { %v159_v40 = vmul.f32 2.0, %v85_v35 }
  0x89   :  { %v165_v54 = vsub.f32 %v157_v51, %v161_v45 }
  0x8a   :  { %v163_v48 = vsub.f32 %v155_v39, %v159_v40  ;;  %v2468_v40 = vshrl.u32 %v124_v12, 7 }
  0x8b   :  { %v2426_v60 = vmax.f32 %v165_v54, 0.0 }
  0x8c   :  { %v88_v41 = vpop.f32.mrf.mxu3  ;;  %v2417_v57 = vmax.f32 %v163_v48, 0.0  ;;  %vm186_vm9 = vcmp.eq.s32.totalorder %v2468_v40, 0  ;;  %vm305_vm11 = vcmp.eq.s32.totalorder %v2468_v40, 1 }
  0x8d   :  { %v160_v44 = vmul.f32 2.0, %v88_v41 }
  0x8e   :  { %v117_v46 = vpop.f32.mrf.mxu1 }
  0x8f   :  { %v164_v49 = vsub.f32 %v156_v43, %v160_v44  ;;  %v162_v50 = vmul.f32 2.0, %v117_v46  ;;  %v187_v44 = vperm.slane %v2415_v56, 0  ;;  %v188_v46 = vperm.slane %v185_v59, 0 }
  0x91   :  { %v2412_v52 = vmax.f32 %v164_v49, 0.0  ;;  %v166_v53 = vsub.f32 %v158_v47, %v162_v50  ;;  %v191_v47 = vsel %vm186_vm9, %v187_v44, 0.0  ;;  %v192_v50 = vsel %vm186_vm9, %v188_v46, 0.0 }
  0x92   :  { %vm491_vm9 = vcmp.eq.s32.totalorder %v2468_v40, 3 }
  0x93   :  { %v2419_v58 = vmax.f32 %v166_v53, 0.0  ;;  %210 = vmatpush.msra.mxu2 %v2412_v52  ;;  %514 = vmatpush.msrb.mxu0 %v2412_v52  ;;  %v246_v63 = vpop.permute.xlu0 %245 }
  0x94   :  { %v256_v7 = vperm.slane %v246_v63, %v2376_v15 }
  0x95   :  { %211 = vmatpush.msra.mxu2 %v2417_v57  ;;  %232 = vmatpush.msrb.mxu3 %v2419_v58 }
  0x96   :  { %515 = vmatpush.msrb.mxu0 %v2417_v57  ;;  %536 = vmatpush.msrb.mxu1 %v2419_v58 }
  0x97   :  { %328 = vmatpush.msrb.mxu2 %v2412_v52  ;;  %233 = vmatpush.msrb.mxu3 %v2426_v60 }
  0x98   :  { %700 = vmatpush.msra.mxu0 %v2412_v52  ;;  %537 = vmatpush.msrb.mxu1 %v2426_v60 }
  0x99   :  { %2122 = vmatmul.msk.f32.vlgmr.msrb.gmra.mxu3 %vm193_vm3, %v185_v59  ;;  %329 = vmatpush.msrb.mxu2 %v2417_v57 }
  0x9a   :  { %350 = vmatpush.msra.mxu3 %v2419_v58  ;;  %701 = vmatpush.msra.mxu0 %v2417_v57  ;;  %v249_v3 = vpop.permute.xlu1 %248 }
  0x9b   :  { %722 = vmatpush.msra.mxu1 %v2419_v58  ;;  %2121 = vmatmul.msk.f32.vlgmr.msra.gmra.mxu2 %vm193_vm3, %v2415_v56  ;;  %v257_v8 = vperm.slane %v249_v3, %v2397_v23 }
  0x9c   :  { %421 = vmatpush.msra.mxu2 %v2412_v52  ;;  %351 = vmatpush.msra.mxu3 %v2426_v60 }
  0x9d   :  { %723 = vmatpush.msra.mxu1 %v2426_v60  ;;  %v2457_v13 = vsel %vm129_vm1, %v257_v8, %v256_v7  ;;  %vm398_vm1 = vcmp.eq.s32.totalorder %v2468_v40, 2 }
  0x9e   :  { %443 = vmatpush.msrb.mxu3 %v2419_v58  ;;  %422 = vmatpush.msra.mxu2 %v2417_v57 }
  0xa0   :  { %444 = vmatpush.msrb.mxu3 %v2426_v60 }
 0x11c   :  { %v235_v9 = vpop.f32.mrf.mxu3 }
 0x11d   :  { %v239_v10 = vmin.f32 %v235_v9, 1e+30 }
 0x11e   :  { %v213_v14 = vpop.f32.mrf.mxu2 }
 0x11f   :  { %v265_v19 = vmul.f32 %v2454_v11, %v239_v10  ;;  %v238_v20 = vmin.f32 %v213_v14, 1e+30 }
 0x121   :  { %v268_v21 = vrot.slane %v265_v19, 7  ;;  %v264_v22 = vmul.f32 %v2457_v13, %v238_v20 }
 0x123   :  { %v269_v24 = vsel %vm134_vm4, %v268_v21, %v264_v22 }
 0x124   :  { %v272_v23 = vsel %vm271_vm5, %v269_v24, -inf }
 0x125   :  { %273 = vmax.xlane.f32.xlu2 %v272_v23 }
 0x198   :  { %v274_v25 = vpop.xlane.xlu2 %273 }
 0x199   :  { %v276_v26 = vrot.slane %v274_v25, 1  ;;  %vm279_vm6 = vcmp.eq.f32.partialorder %v264_v22, %v274_v25 }
 0x19a   :  { %v281_v30 = vsel %vm279_vm6, %v2376_v15, 16 }
 0x19b   :  { %vm280_vm7 = vcmp.eq.f32.partialorder %v265_v19, %v276_v26 }
 0x19c   :  { %v282_v27 = vsel %vm280_vm7, %v2376_v15, 16 }
 0x19d   :  { %v283_v29 = vrot.slane %v282_v27, 7 }
 0x19f   :  { %v284_v31 = vsel %vm134_vm4, %v283_v29, %v281_v30 }
 0x1a0   :  { %v285_v32 = vsel %vm271_vm5, %v284_v31, 2147483647 }
 0x1a1   :  { %v287_v33 = vshra.s32 %v285_v32, 16  ;;  %v286_v35 = vand.u32 65535, %v285_v32 }
 0x1a3   :  { %v289_v34 = vcvt.s32.f32 %v287_v33  ;;  %v288_v37 = vcvt.s32.f32 %v286_v35 }
 0x1a5   :  { %290 = vmin.xlane.f32.xlu1 %v289_v34 }
 0x218   :  { %v291_v36 = vpop.xlane.xlu1 %290 }
 0x219   :  { %vm292_vm8 = vcmp.eq.f32.partialorder %v289_v34, %v291_v36  ;;  %v297_v39 = vcvt.f32.s32 %v291_v36 }
 0x21a   :  { %v293_v38 = vsel %vm292_vm8, %v288_v37, inf }
 0x21b   :  { %294 = vmin.xlane.f32.xlu0 %v293_v38  ;;  %v298_v42 = vshll.u32 %v297_v39, 16 }
 0x28e   :  { %v295_v41 = vpop.xlane.xlu0 %294 }
 0x28f   :  { %v296_v43 = vcvt.f32.s32 %v295_v41 }
 0x291   :  { %v299_v45 = vadd.s32 %v298_v42, %v296_v43 }
 0x293   :  { %vm300_vm10 = vcmp.eq.s32.totalorder %v2376_v15, %v299_v45 }
 0x294   :  { %v2123_v48 = vsel %vm300_vm10, 1.0, %v2264_v55 }
 0x295   :  { %v304_v12 = vrot.slane %v2123_v48, 1  ;;  %v306_v49 = vperm.slane %v2123_v48, 0  ;;  %2124 = vmatmul.msk.f32.vlgmr.msrb.gmra.mxu2 %vm193_vm3, %v2123_v48 }
 0x296   :  { %607 = vmatpush.msrb.mxu2 %v2412_v52 }
 0x297   :  { %v307_v51 = vperm.slane %v304_v12, 0  ;;  %v310_v53 = vsel %vm305_vm11, %v306_v49, %v191_v47  ;;  %2125 = vmatmul.msk.f32.vlgmr.msra.gmra.mxu3 %vm193_vm3, %v304_v12 }
 0x298   :  { %608 = vmatpush.msrb.mxu2 %v2417_v57  ;;  %629 = vmatpush.msra.mxu3 %v2419_v58 }
 0x299   :  { %v311_v54 = vsel %vm305_vm11, %v307_v51, %v192_v50 }
 0x29a   :  { %630 = vmatpush.msra.mxu3 %v2426_v60 }
 0x318   :  { %v331_v56 = vpop.f32.mrf.mxu2 }
 0x319   :  { %v356_v61 = vmin.f32 %v238_v20, %v331_v56 }
 0x31a   :  { %v353_v59 = vpop.f32.mrf.mxu3 }
 0x31b   :  { %v357_v62 = vmin.f32 %v239_v10, %v353_v59  ;;  %v358_v3 = vmul.f32 %v356_v61, %v2457_v13 }
 0x31d   :  { %v359_v63 = vmul.f32 %v357_v62, %v2454_v11 }
 0x31f   :  { %v362_v5 = vrot.slane %v359_v63, 7 }
 0x321   :  { %v363_v6 = vsel %vm134_vm4, %v362_v5, %v358_v3 }
 0x322   :  { %v365_v7 = vsel %vm271_vm5, %v363_v6, -inf }
 0x323   :  { %366 = vmax.xlane.f32.xlu2 %v365_v7 }
 0x396   :  { %v367_v8 = vpop.xlane.xlu2 %366 }
 0x397   :  { %v369_v9 = vrot.slane %v367_v8, 1  ;;  %vm372_vm12 = vcmp.eq.f32.partialorder %v358_v3, %v367_v8 }
 0x398   :  { %v374_v20 = vsel %vm372_vm12, %v2376_v15, 16 }
 0x399   :  { %vm373_vm13 = vcmp.eq.f32.partialorder %v359_v63, %v369_v9 }
 0x39a   :  { %v375_v14 = vsel %vm373_vm13, %v2376_v15, 16 }
 0x39b   :  { %v376_v19 = vrot.slane %v375_v14, 7 }
 0x39d   :  { %v377_v10 = vsel %vm134_vm4, %v376_v19, %v374_v20 }
 0x39e   :  { %v378_v21 = vsel %vm271_vm5, %v377_v10, 2147483647 }
 0x39f   :  { %v380_v22 = vshra.s32 %v378_v21, 16  ;;  %v379_v23 = vand.u32 65535, %v378_v21 }
 0x3a1   :  { %v382_v24 = vcvt.s32.f32 %v380_v22  ;;  %v381_v26 = vcvt.s32.f32 %v379_v23 }
 0x3a3   :  { %383 = vmin.xlane.f32.xlu2 %v382_v24 }
 0x416   :  { %v384_v25 = vpop.xlane.xlu2 %383 }
 0x417   :  { %vm385_vm14 = vcmp.eq.f32.partialorder %v382_v24, %v384_v25  ;;  %v390_v29 = vcvt.f32.s32 %v384_v25 }
 0x418   :  { %v386_v27 = vsel %vm385_vm14, %v381_v26, inf  ;;  %vm584_vm14 = vcmp.eq.s32.totalorder %v2468_v40, 4 }
 0x419   :  { %387 = vmin.xlane.f32.xlu2 %v386_v27  ;;  %v391_v31 = vshll.u32 %v390_v29, 16 }
 0x48c   :  { %v388_v30 = vpop.xlane.xlu2 %387 }
 0x48d   :  { %v389_v32 = vcvt.f32.s32 %v388_v30 }
 0x48f   :  { %v392_v33 = vadd.s32 %v391_v31, %v389_v32 }
 0x491   :  { %vm393_vm15 = vcmp.eq.s32.totalorder %v2376_v15, %v392_v33 }
 0x492   :  { %v2126_v34 = vsel %vm393_vm15, 1.0, %v2264_v55 }
 0x493   :  { %v397_v35 = vrot.slane %v2126_v34, 1  ;;  %v399_v36 = vperm.slane %v2126_v34, 0  ;;  %2127 = vmatmul.msk.f32.vlgmr.msra.gmra.mxu2 %vm193_vm3, %v2126_v34 }
 0x494   :  { %793 = vmatpush.msra.mxu2 %v2412_v52 }
 0x495   :  { %v400_v37 = vperm.slane %v397_v35, 0  ;;  %v403_v38 = vsel %vm398_vm1, %v399_v36, %v310_v53  ;;  %2128 = vmatmul.msk.f32.vlgmr.msrb.gmra.mxu3 %vm193_vm3, %v397_v35 }
 0x496   :  { %794 = vmatpush.msra.mxu2 %v2417_v57  ;;  %815 = vmatpush.msrb.mxu3 %v2419_v58 }
 0x497   :  { %v404_v39 = vsel %vm398_vm1, %v400_v37, %v311_v54 }
 0x498   :  { %816 = vmatpush.msrb.mxu3 %v2426_v60 }
 0x516   :  { %v424_v41 = vpop.f32.mrf.mxu2 }
 0x517   :  { %v449_v43 = vmin.f32 %v356_v61, %v424_v41 }
 0x518   :  { %v446_v42 = vpop.f32.mrf.mxu3 }
 0x519   :  { %v450_v44 = vmin.f32 %v357_v62, %v446_v42  ;;  %v451_v46 = vmul.f32 %v449_v43, %v2457_v13 }
 0x51b   :  { %v452_v45 = vmul.f32 %v450_v44, %v2454_v11 }
 0x51d   :  { %v455_v52 = vrot.slane %v452_v45, 7 }
 0x51f   :  { %v456_v47 = vsel %vm134_vm4, %v455_v52, %v451_v46 }
 0x520   :  { %v458_v48 = vsel %vm271_vm5, %v456_v47, -inf }
 0x521   :  { %459 = vmax.xlane.f32.xlu2 %v458_v48 }
 0x594   :  { %v460_v57 = vpop.xlane.xlu2 %459 }
 0x595   :  { %v462_v12 = vrot.slane %v460_v57, 1  ;;  %vm465_vm2 = vcmp.eq.f32.partialorder %v451_v46, %v460_v57 }
 0x596   :  { %v467_v49 = vsel %vm465_vm2, %v2376_v15, 16 }
 0x597   :  { %vm466_vm6 = vcmp.eq.f32.partialorder %v452_v45, %v462_v12 }
 0x598   :  { %v468_v58 = vsel %vm466_vm6, %v2376_v15, 16 }
 0x599   :  { %v469_v60 = vrot.slane %v468_v58, 7 }
 0x59b   :  { %v470_v50 = vsel %vm134_vm4, %v469_v60, %v467_v49 }
 0x59c   :  { %v471_v51 = vsel %vm271_vm5, %v470_v50, 2147483647 }
 0x59d   :  { %v473_v53 = vshra.s32 %v471_v51, 16  ;;  %v472_v56 = vand.u32 65535, %v471_v51 }
 0x59f   :  { %v475_v54 = vcvt.s32.f32 %v473_v53  ;;  %v474_v61 = vcvt.s32.f32 %v472_v56 }
 0x5a1   :  { %476 = vmin.xlane.f32.xlu1 %v475_v54 }
 0x614   :  { %v477_v59 = vpop.xlane.xlu1 %476 }
 0x615   :  { %vm478_vm7 = vcmp.eq.f32.partialorder %v475_v54, %v477_v59  ;;  %v483_v63 = vcvt.f32.s32 %v477_v59 }
 0x616   :  { %v479_v62 = vsel %vm478_vm7, %v474_v61, inf  ;;  %vm677_vm7 = vcmp.eq.s32.totalorder %v2468_v40, 5 }
 0x617   :  { %480 = vmin.xlane.f32.xlu2 %v479_v62  ;;  %v484_v5 = vshll.u32 %v483_v63, 16 }
 0x68a   :  { %v481_v3 = vpop.xlane.xlu2 %480 }
 0x68b   :  { %v482_v6 = vcvt.f32.s32 %v481_v3 }
 0x68d   :  { %v485_v7 = vadd.s32 %v484_v5, %v482_v6 }
 0x68f   :  { %vm486_vm8 = vcmp.eq.s32.totalorder %v2376_v15, %v485_v7 }
 0x690   :  { %v2129_v8 = vsel %vm486_vm8, 1.0, %v2264_v55 }
 0x691   :  { %v490_v9 = vrot.slane %v2129_v8, 1  ;;  %v492_v14 = vperm.slane %v2129_v8, 0  ;;  %2130 = vmatmul.msk.f32.vlgmr.msrb.gmra.mxu0 %vm193_vm3, %v2129_v8 }
 0x692   :  { %887 = vmatpush.msrb.mxu0 %v2326_v0 }
 0x693   :  { %v493_v19 = vperm.slane %v490_v9, 0  ;;  %v496_v20 = vsel %vm491_vm9, %v492_v14, %v403_v38  ;;  %2131 = vmatmul.msk.f32.vlgmr.msrb.gmra.mxu1 %vm193_vm3, %v490_v9 }
 0x694   :  { %888 = vmatpush.msrb.mxu0 %v2347_v4  ;;  %910 = vmatpush.msrb.mxu1 %v2331_v1 }
 0x695   :  { %v497_v10 = vsel %vm491_vm9, %v493_v19, %v404_v39 }
 0x696   :  { %911 = vmatpush.msrb.mxu1 %v2336_v2 }
 0x70e   :  { %v517_v21 = vpop.f32.mrf.mxu0 }
 0x70f   :  { %v542_v24 = vmin.f32 %v449_v43, %v517_v21 }
 0x710   :  { %v539_v22 = vpop.f32.mrf.mxu1 }
 0x711   :  { %v543_v23 = vmin.f32 %v450_v44, %v539_v22  ;;  %v544_v26 = vmul.f32 %v542_v24, %v2457_v13 }
 0x713   :  { %v545_v25 = vmul.f32 %v543_v23, %v2454_v11 }
 0x715   :  { %v548_v27 = vrot.slane %v545_v25, 7 }
 0x717   :  { %v549_v29 = vsel %vm134_vm4, %v548_v27, %v544_v26 }
 0x718   :  { %v551_v30 = vsel %vm271_vm5, %v549_v29, -inf }
 0x719   :  { %552 = vmax.xlane.f32.xlu1 %v551_v30 }
 0x78c   :  { %v553_v31 = vpop.xlane.xlu1 %552 }
 0x78d   :  { %v555_v32 = vrot.slane %v553_v31, 1  ;;  %vm558_vm10 = vcmp.eq.f32.partialorder %v544_v26, %v553_v31 }
 0x78e   :  { %v560_v33 = vsel %vm558_vm10, %v2376_v15, 16 }
 0x78f   :  { %vm559_vm11 = vcmp.eq.f32.partialorder %v545_v25, %v555_v32 }
 0x790   :  { %v561_v1 = vsel %vm559_vm11, %v2376_v15, 16 }
 0x791   :  { %v562_v2 = vrot.slane %v561_v1, 7 }
 0x793   :  { %v563_v34 = vsel %vm134_vm4, %v562_v2, %v560_v33 }
 0x794   :  { %v564_v35 = vsel %vm271_vm5, %v563_v34, 2147483647 }
 0x795   :  { %v566_v36 = vshra.s32 %v564_v35, 16  ;;  %v565_v38 = vand.u32 65535, %v564_v35 }
 0x797   :  { %v568_v37 = vcvt.s32.f32 %v566_v36  ;;  %v567_v41 = vcvt.s32.f32 %v565_v38 }
 0x799   :  { %569 = vmin.xlane.f32.xlu2 %v568_v37 }
 0x80c   :  { %v570_v39 = vpop.xlane.xlu2 %569 }
 0x80d   :  { %vm571_vm12 = vcmp.eq.f32.partialorder %v568_v37, %v570_v39  ;;  %v576_v43 = vcvt.f32.s32 %v570_v39 }
 0x80e   :  { %v572_v42 = vsel %vm571_vm12, %v567_v41, inf  ;;  %vm770_vm12 = vcmp.eq.s32.totalorder %v2468_v40, 6 }
 0x80f   :  { %573 = vmin.xlane.f32.xlu0 %v572_v42  ;;  %v577_v45 = vshll.u32 %v576_v43, 16 }
 0x882   :  { %v574_v44 = vpop.xlane.xlu0 %573 }
 0x883   :  { %v575_v46 = vcvt.f32.s32 %v574_v44 }
 0x885   :  { %v578_v52 = vadd.s32 %v577_v45, %v575_v46 }
 0x887   :  { %vm579_vm13 = vcmp.eq.s32.totalorder %v2376_v15, %v578_v52 }
 0x888   :  { %v2132_v47 = vsel %vm579_vm13, 1.0, %v2264_v55 }
 0x889   :  { %v583_v48 = vrot.slane %v2132_v47, 1  ;;  %v585_v57 = vperm.slane %v2132_v47, 0  ;;  %2133 = vmatmul.msk.f32.vlgmr.msrb.gmra.mxu2 %vm193_vm3, %v2132_v47 }
 0x88a   :  { %930 = vmatpush.msrb.mxu2 %v2386_v17 }
 0x88b   :  { %v586_v12 = vperm.slane %v583_v48, 0  ;;  %v589_v58 = vsel %vm584_vm14, %v585_v57, %v496_v20  ;;  %2134 = vmatmul.msk.f32.vlgmr.msra.gmra.mxu3 %vm193_vm3, %v583_v48 }
 0x88c   :  { %931 = vmatpush.msrb.mxu2 %v2381_v16  ;;  %950 = vmatpush.msra.mxu3 %v2402_v28 }
 0x88d   :  { %v590_v60 = vsel %vm584_vm14, %v586_v12, %v497_v10 }
 0x88e   :  { %951 = vmatpush.msra.mxu3 %v2391_v18 }
 0x90c   :  { %v610_v49 = vpop.f32.mrf.mxu2 }
 0x90d   :  { %v635_v51 = vmin.f32 %v542_v24, %v610_v49 }
 0x90e   :  { %v632_v50 = vpop.f32.mrf.mxu3 }
 0x90f   :  { %v636_v53 = vmin.f32 %v543_v23, %v632_v50  ;;  %v637_v56 = vmul.f32 %v635_v51, %v2457_v13 }
 0x911   :  { %v638_v54 = vmul.f32 %v636_v53, %v2454_v11 }
 0x913   :  { %v641_v17 = vrot.slane %v638_v54, 7 }
 0x915   :  { %v642_v59 = vsel %vm134_vm4, %v641_v17, %v637_v56 }
 0x916   :  { %v644_v61 = vsel %vm271_vm5, %v642_v59, -inf }
 0x917   :  { %645 = vmax.xlane.f32.xlu1 %v644_v61 }
 0x98a   :  { %v646_v16 = vpop.xlane.xlu1 %645 }
 0x98b   :  { %v648_v62 = vrot.slane %v646_v16, 1  ;;  %vm651_vm15 = vcmp.eq.f32.partialorder %v637_v56, %v646_v16 }
 0x98c   :  { %v653_v63 = vsel %vm651_vm15, %v2376_v15, 16 }
 0x98d   :  { %vm652_vm1 = vcmp.eq.f32.partialorder %v638_v54, %v648_v62 }
 0x98e   :  { %v654_v18 = vsel %vm652_vm1, %v2376_v15, 16  ;;  %vm1210_vm1 = vcmask 1043456  }
 0x98f   :  { %v655_v28 = vrot.slane %v654_v18, 7 }
 0x991   :  { %v656_v3 = vsel %vm134_vm4, %v655_v28, %v653_v63 }
 0x992   :  { %v657_v5 = vsel %vm271_vm5, %v656_v3, 2147483647 }
 0x993   :  { %v659_v6 = vshra.s32 %v657_v5, 16  ;;  %v658_v8 = vand.u32 65535, %v657_v5 }
 0x995   :  { %v661_v7 = vcvt.s32.f32 %v659_v6  ;;  %v660_v14 = vcvt.s32.f32 %v658_v8 }
 0x997   :  { %662 = vmin.xlane.f32.xlu2 %v661_v7 }
 0xa0a   :  { %v663_v9 = vpop.xlane.xlu2 %662 }
 0xa0b   :  { %vm664_vm2 = vcmp.eq.f32.partialorder %v661_v7, %v663_v9  ;;  %v669_v20 = vcvt.f32.s32 %v663_v9 }
 0xa0c   :  { %v665_v19 = vsel %vm664_vm2, %v660_v14, inf }
 0xa0d   :  { %666 = vmin.xlane.f32.xlu0 %v665_v19  ;;  %v670_v21 = vshll.u32 %v669_v20, 16 }
 0xa80   :  { %v667_v10 = vpop.xlane.xlu0 %666 }
 0xa81   :  { %v668_v22 = vcvt.f32.s32 %v667_v10 }
 0xa83   :  { %v671_v24 = vadd.s32 %v670_v21, %v668_v22 }
 0xa85   :  { %vm672_vm6 = vcmp.eq.s32.totalorder %v2376_v15, %v671_v24 }
 0xa86   :  { %v2135_v23 = vsel %vm672_vm6, 1.0, %v2264_v55  ;;  %vm863_vm6 = vcmp.eq.s32.totalorder %v2468_v40, 7  ;;  %v39_v40 = vld [vmem:[%s3116_s0 + $0x10] sm:$0xff] }
 0xa87   :  { %v676_v25 = vrot.slane %v2135_v23, 1  ;;  %v678_v26 = vperm.slane %v2135_v23, 0  ;;  %2136 = vmatmul.msk.f32.vlgmr.msra.gmra.mxu0 %vm193_vm3, %v2135_v23 }
 0xa89   :  { %v679_v27 = vperm.slane %v676_v25, 0  ;;  %2137 = vmatmul.msk.f32.vlgmr.msra.gmra.mxu1 %vm193_vm3, %v676_v25  ;;  %v682_v29 = vsel %vm677_vm7, %v678_v26, %v589_v58  ;;  %v1196_v26 = vld [vmem:[%s3119_s3] sm:$0xf] }
 0xa8a   :  { %2146 = vmatpush.msk.msra.mxu0 %vm1210_vm1, %v1196_v26 }
 0xa8b   :  { %v683_v30 = vsel %vm677_vm7, %v679_v27, %v590_v60  ;;  %v1243_v27 = vld [vmem:[%s3120_s4] sm:$0x7]  ;;  %vm1197_vm7 = vcmask 31744  }
 0xb04   :  { %v703_v31 = vpop.f32.mrf.mxu0 }
 0xb05   :  { %v728_v1 = vmin.f32 %v635_v51, %v703_v31 }
 0xb06   :  { %v725_v32 = vpop.f32.mrf.mxu1 }
 0xb07   :  { %v729_v2 = vmin.f32 %v636_v53, %v725_v32  ;;  %v730_v34 = vmul.f32 %v728_v1, %v2457_v13 }
 0xb09   :  { %v731_v33 = vmul.f32 %v729_v2, %v2454_v11 }
 0xb0b   :  { %v734_v35 = vrot.slane %v731_v33, 7 }
 0xb0d   :  { %v735_v36 = vsel %vm134_vm4, %v734_v35, %v730_v34 }
 0xb0e   :  { %v737_v37 = vsel %vm271_vm5, %v735_v36, -inf }
 0xb0f   :  { %738 = vmax.xlane.f32.xlu1 %v737_v37 }
 0xb82   :  { %v739_v38 = vpop.xlane.xlu1 %738 }
 0xb83   :  { %v741_v39 = vrot.slane %v739_v38, 1  ;;  %vm744_vm8 = vcmp.eq.f32.partialorder %v730_v34, %v739_v38  ;;  %v40_v38 = vld [vmem:[%s3116_s0 + $0x18] sm:$0xff] }
 0xb84   :  { %v746_v43 = vsel %vm744_vm8, %v2376_v15, 16  ;;  %vm1565_vm8 = vcmask 261120  }
 0xb85   :  { %vm745_vm9 = vcmp.eq.f32.partialorder %v731_v33, %v741_v39 }
 0xb86   :  { %v747_v41 = vsel %vm745_vm9, %v2376_v15, 16 }
 0xb87   :  { %v748_v42 = vrot.slane %v747_v41, 7 }
 0xb89   :  { %v749_v44 = vsel %vm134_vm4, %v748_v42, %v746_v43 }
 0xb8a   :  { %v750_v45 = vsel %vm271_vm5, %v749_v44, 2147483647 }
 0xb8b   :  { %v752_v46 = vshra.s32 %v750_v45, 16  ;;  %v751_v47 = vand.u32 65535, %v750_v45 }
 0xb8d   :  { %v754_v52 = vcvt.s32.f32 %v752_v46  ;;  %v753_v57 = vcvt.s32.f32 %v751_v47 }
 0xb8f   :  { %755 = vmin.xlane.f32.xlu2 %v754_v52 }
 0xc02   :  { %v756_v48 = vpop.xlane.xlu2 %755 }
 0xc03   :  { %vm757_vm10 = vcmp.eq.f32.partialorder %v754_v52, %v756_v48  ;;  %v762_v58 = vcvt.f32.s32 %v756_v48 }
 0xc04   :  { %v758_v12 = vsel %vm757_vm10, %v753_v57, inf }
 0xc05   :  { %759 = vmin.xlane.f32.xlu0 %v758_v12  ;;  %v763_v49 = vshll.u32 %v762_v58, 16 }
 0xc78   :  { %v760_v60 = vpop.xlane.xlu0 %759 }
 0xc79   :  { %v761_v50 = vcvt.f32.s32 %v760_v60 }
 0xc7b   :  { %v764_v51 = vadd.s32 %v763_v49, %v761_v50 }
 0xc7d   :  { %vm765_vm11 = vcmp.eq.s32.totalorder %v2376_v15, %v764_v51 }
 0xc7e   :  { %v2138_v53 = vsel %vm765_vm11, 1.0, %v2264_v55 }
 0xc7f   :  { %v769_v54 = vrot.slane %v2138_v53, 1  ;;  %v771_v56 = vperm.slane %v2138_v53, 0  ;;  %2139 = vmatmul.msk.f32.vlgmr.msra.gmra.mxu2 %vm193_vm3, %v2138_v53 }
 0xc81   :  { %v772_v17 = vperm.slane %v769_v54, 0  ;;  %2140 = vmatmul.msk.f32.vlgmr.msrb.gmra.mxu3 %vm193_vm3, %v769_v54  ;;  %v775_v59 = vsel %vm770_vm12, %v771_v56, %v682_v29 }
 0xc83   :  { %v776_v61 = vsel %vm770_vm12, %v772_v17, %v683_v30 }
 0xd02   :  { %v796_v16 = vpop.f32.mrf.mxu2 }
 0xd03   :  { %v821_v18 = vmin.f32 %v728_v1, %v796_v16 }
 0xd04   :  { %v818_v62 = vpop.f32.mrf.mxu3 }
 0xd05   :  { %v822_v28 = vmin.f32 %v729_v2, %v818_v62  ;;  %v823_v3 = vmul.f32 %v821_v18, %v2457_v13 }
 0xd07   :  { %v824_v63 = vmul.f32 %v822_v28, %v2454_v11 }
 0xd09   :  { %v827_v5 = vrot.slane %v824_v63, 7 }
 0xd0b   :  { %v828_v6 = vsel %vm134_vm4, %v827_v5, %v823_v3 }
 0xd0c   :  { %v830_v7 = vsel %vm271_vm5, %v828_v6, -inf }
 0xd0d   :  { %831 = vmax.xlane.f32.xlu1 %v830_v7 }
 0xd80   :  { %v832_v8 = vpop.xlane.xlu1 %831 }
 0xd81   :  { %v834_v9 = vrot.slane %v832_v8, 1  ;;  %vm837_vm13 = vcmp.eq.f32.partialorder %v823_v3, %v832_v8 }
 0xd82   :  { %v839_v20 = vsel %vm837_vm13, %v2376_v15, 16 }
 0xd83   :  { %vm838_vm14 = vcmp.eq.f32.partialorder %v824_v63, %v834_v9 }
 0xd84   :  { %v840_v14 = vsel %vm838_vm14, %v2376_v15, 16 }
 0xd85   :  { %v841_v19 = vrot.slane %v840_v14, 7 }
 0xd87   :  { %v842_v10 = vsel %vm134_vm4, %v841_v19, %v839_v20 }
 0xd88   :  { %v843_v11 = vsel %vm271_vm5, %v842_v10, 2147483647  ;;  %vm1340_vm5 = vcmask 1042432  }
 0xd89   :  { %v845_v13 = vshra.s32 %v843_v11, 16  ;;  %v844_v22 = vand.u32 65535, %v843_v11  ;;  %2218 = vmatpush.msk.msra.mxu1 %vm1340_vm5, %v1243_v27 }
 0xd8b   :  { %v847_v21 = vcvt.s32.f32 %v845_v13  ;;  %v846_v23 = vcvt.s32.f32 %v844_v22 }
 0xd8d   :  { %848 = vmin.xlane.f32.xlu2 %v847_v21 }
 0xe00   :  { %v849_v24 = vpop.xlane.xlu2 %848 }
 0xe01   :  { %vm850_vm15 = vcmp.eq.f32.partialorder %v847_v21, %v849_v24  ;;  %v855_v29 = vcvt.f32.s32 %v849_v24  ;;  %v2674_v24 = vld [vmem:[%s3117_s1 + $0x10] sm:$0xff] }
 0xe02   :  { %v851_v25 = vsel %vm850_vm15, %v846_v23, inf }
 0xe03   :  { %852 = vmin.xlane.f32.xlu0 %v851_v25  ;;  %v856_v31 = vshll.u32 %v855_v29, 16  ;;  %v2234_v29 = vld [vmem:[%s3117_s1] sm:$0xff] }
 0xe76   :  { %v853_v30 = vpop.xlane.xlu0 %852 }
 0xe77   :  { %v854_v32 = vcvt.f32.s32 %v853_v30 }
 0xe79   :  { %v857_v1 = vadd.s32 %v856_v31, %v854_v32  ;;  %v2235_v31 = vld [vmem:[%s3117_s1 + $0x8] sm:$0xff] }
 0xe7b   :  { %vm858_vm2 = vcmp.eq.s32.totalorder %v2376_v15, %v857_v1  ;;  %v37_v15 = vld [vmem:[%s3116_s0] sm:$0xff] }
 0xe7c   :  { %v2141_v2 = vsel %vm858_vm2, 1.0, %v2264_v55  ;;  %v38_v55 = vld [vmem:[%s3116_s0 + $0x8] sm:$0xff]  ;;  %s2092_s0 = sshll.u32 %s3124_s8, 4  ;;  %s2093_s0 = int_to_ptr.hbm [resolvable:$true] %s2092_s0 }
 0xe7d   :  { %v862_v33 = vrot.slane %v2141_v2, 1  ;;  %v864_v34 = vperm.slane %v2141_v2, 0 }
 0xe7f   :  { %v865_v35 = vperm.slane %v862_v33, 0  ;;  %v868_v36 = vsel %vm863_vm6, %v864_v34, %v775_v59 }
 0xe80   :  { %2142 = vmatmul.msk.f32.vlgmr.msrb.gmra.mxu0 %vm193_vm3, %v868_v36  ;;  %2144 = vmatmul.msk.f32.vlgmr.msrb.gmra.mxu2 %vm193_vm3, %v868_v36  ;;  %v2703_v36 = vld [vmem:[%s3117_s1 + $0x18] sm:$0xff] }
 0xe81   :  { %v869_v37 = vsel %vm863_vm6, %v865_v35, %v776_v61  ;;  %2151 = vmatpush.msk.msrb.mxu0 %vm1340_vm5, %v1243_v27  ;;  %vm135_vm5 = vcmask 1042434  }
 0xe82   :  { %2143 = vmatmul.msk.f32.vlgmr.msrb.gmra.mxu1 %vm193_vm3, %v869_v37  ;;  %2145 = vmatmul.msk.f32.vlgmr.msra.gmra.mxu3 %vm193_vm3, %v869_v37  ;;  %vm2083_vm3 = vcmask 7168  }
 0xe88   :  { %2147 = vmatmul.msk.f32.vlgmr.msra.gmra.mxu0 %vm1197_vm7, %v37_v15 }
 0xe90   :  { %2148 = vmatmul.msk.f32.gmra.mxu0 %vm1197_vm7, %v38_v55 }
 0xe98   :  { %2149 = vmatmul.msk.f32.gmra.mxu0 %vm1197_vm7, %v39_v40 }
 0xea0   :  { %2150 = vmatmul.msk.f32.gmra.mxu0 %vm1197_vm7, %v40_v38 }
 0xefd   :  { %v2595_v39 = vpop.f32.mrf.mxu0 }
 0xefe   :  { %2081 = vst.msk [vmem:[%s3125_s9] sm:$0xff] %vm49_vm0, %v2595_v39  ;;  %v972_v41 = vperm.slane %v2595_v39, 0  ;;  %v964_v42 = vrot.slane %v2595_v39, 7  ;;  %v958_v43 = vrot.slane %v2595_v39, 1  ;;  %v959_v44 = vrot.slane %v2595_v39, 2 }
 0xeff   :  { %v2606_v45 = vpop.f32.mrf.mxu1  ;;  %v960_v53 = vrot.slane %v2595_v39, 3  ;;  %v961_v18 = vrot.slane %v2595_v39, 4  ;;  %v962_v8 = vrot.slane %v2595_v39, 5  ;;  %v963_v25 = vrot.slane %v2595_v39, 6 }
 0xf00   :  { %2082 = vst.msk [vmem:[%s3125_s9 + $0x8] sm:$0xff] %vm49_vm0, %v2606_v45  ;;  %v1004_v46 = vsub.f32 %v2347_v4, %v972_v41  ;;  %v979_v52 = vperm.slane %v964_v42, 0  ;;  %v1005_v47 = vsub.f32 %v2326_v0, %v972_v41  ;;  %v973_v48 = vperm.slane %v958_v43, 0  ;;  %s2267_s9 = smov 8  }
 0xf01   :  { %v974_v57 = vperm.slane %v959_v44, 0  ;;  %v975_v3 = vperm.slane %v960_v53, 0  ;;  %v976_v7 = vperm.slane %v961_v18, 0  ;;  %v980_v11 = vperm.slane %v2606_v45, 0 }
 0xf02   :  { %2152 = vmatmul.msk.f32.vlgmr.msrb.gmra.mxu0 %vm49_vm0, %v1004_v46  ;;  %v2617_v12 = vsub.f32 %v2347_v4, %v979_v52  ;;  %v1037_v58 = vmul.f32 %v1005_v47, %v1005_v47  ;;  %v1036_v60 = vmul.f32 %v1004_v46, %v1004_v46  ;;  %v1006_v49 = vsub.f32 %v2347_v4, %v973_v48 }
 0xf03   :  { %v933_v50 = vpop.f32.mrf.mxu2  ;;  %v2621_v51 = vsub.f32 %v2347_v4, %v974_v57  ;;  %v1007_v59 = vsub.f32 %v2326_v0, %v973_v48  ;;  %v2639_v62 = vsub.f32 %v2326_v0, %v974_v57  ;;  %v2646_v5 = vsub.f32 %v2326_v0, %v979_v52 }
 0xf04   :  { %2084 = vst.msk [vmem:[%s3126_s10] sm:$0xff] %vm2083_vm3, %v933_v50  ;;  %2166 = vmatmul.msk.f32.vlgmr.msra.gmra.mxu1 %vm49_vm0, %v2617_v12  ;;  %v1071_v54 = vsel %vm49_vm0, %v1037_v58, 0.0  ;;  %v1068_v56 = vsel %vm49_vm0, %v1036_v60, 0.0  ;;  %v1038_v17 = vmul.f32 %v1006_v49, %v1006_v49  ;;  %v2656_v19 = vsub.f32 %v2326_v0, %v975_v3 }
 0xf05   :  { %1072 = vadd.xlane.f32.xlu2 %v1071_v54  ;;  %1069 = vadd.xlane.f32.xlu1 %v1068_v56  ;;  %v953_v61 = vpop.f32.mrf.mxu3  ;;  %v1040_v28 = vmul.f32 %v2621_v51, %v2621_v51  ;;  %v1039_v63 = vmul.f32 %v1007_v59, %v1007_v59  ;;  %v1041_v6 = vmul.f32 %v2639_v62, %v2639_v62  ;;  %v977_v22 = vperm.slane %v962_v8, 0 }
 0xf06   :  { %2085 = vst.msk [vmem:[%s3126_s10 + $0x8] sm:$0xff] %vm2083_vm3, %v953_v61  ;;  %v1074_v16 = vsel %vm49_vm0, %v1038_v17, 0.0  ;;  %v2659_v20 = vsub.f32 %v2347_v4, %v975_v3  ;;  %v2664_v13 = vsub.f32 %v2347_v4, %v976_v7  ;;  %v1043_v21 = vmul.f32 %v2656_v19, %v2656_v19 }
 0xf07   :  { %1075 = vadd.xlane.f32.xlu0 %v1074_v16  ;;  %v1080_v9 = vsel %vm49_vm0, %v1040_v28, 0.0  ;;  %v1077_v14 = vsel %vm49_vm0, %v1039_v63, 0.0  ;;  %v1083_v10 = vsel %vm49_vm0, %v1041_v6, 0.0  ;;  %v1020_v23 = vsub.f32 %v2674_v24, %v980_v11 }
 0xf08   :  { %v1042_v0 = vmul.f32 %v2659_v20, %v2659_v20  ;;  %v1044_v4 = vmul.f32 %v2664_v13, %v2664_v13  ;;  %v1089_v26 = vsel %vm49_vm0, %v1043_v21, 0.0  ;;  %v2686_v30 = vsub.f32 %v2234_v29, %v977_v22 }
 0xf09   :  { %v2691_v32 = vsub.f32 %v2235_v31, %v976_v7  ;;  %v965_v2 = vrot.slane %v2606_v45, 1  ;;  %v978_v35 = vperm.slane %v963_v25, 0  ;;  %v1021_v37 = vsub.f32 %v2703_v36, %v980_v11 }
 0xf0a   :  { %2153 = vmatmul.msk.f32.gmra.mxu0 %vm49_vm0, %v1005_v47  ;;  %v1086_v27 = vsel %vm49_vm0, %v1042_v0, 0.0  ;;  %v1092_v1 = vsel %vm49_vm0, %v1044_v4, 0.0  ;;  %v1046_v33 = vmul.f32 %v2686_v30, %v2686_v30  ;;  %v1052_v15 = vmul.f32 %v1020_v23, %v1020_v23 }
 0xf0b   :  { %v1045_v34 = vmul.f32 %v2691_v32, %v2691_v32  ;;  %v981_v55 = vperm.slane %v965_v2, 0  ;;  %v2709_v39 = vsub.f32 %v2235_v31, %v978_v35  ;;  %v967_v43 = vrot.slane %v2606_v45, 3 }
 0xf0c   :  { %2167 = vmatmul.msk.f32.gmra.mxu1 %vm49_vm0, %v2646_v5  ;;  %v1098_v40 = vsel %vm49_vm0, %v1046_v33, 0.0  ;;  %v1116_v41 = vsel %vm49_vm0, %v1052_v15, 0.0  ;;  %v1053_v46 = vmul.f32 %v1021_v37, %v1021_v37  ;;  %v2722_v60 = vsub.f32 %v2235_v31, %v977_v22 }
 0xf0d   :  { %1081 = vadd.xlane.f32.xlu2 %v1080_v9  ;;  %1078 = vadd.xlane.f32.xlu1 %v1077_v14  ;;  %v1095_v38 = vsel %vm49_vm0, %v1045_v34, 0.0  ;;  %v1023_v42 = vsub.f32 %v2703_v36, %v981_v55  ;;  %v1049_v44 = vmul.f32 %v2709_v39, %v2709_v39  ;;  %v1022_v52 = vsub.f32 %v2674_v24, %v981_v55 }
 0xf0e   :  { %v983_v48 = vperm.slane %v967_v43, 0  ;;  %v1119_v58 = vsel %vm49_vm0, %v1053_v46, 0.0  ;;  %v1050_v53 = vmul.f32 %v2617_v12, %v2617_v12  ;;  %v1047_v54 = vmul.f32 %v2722_v60, %v2722_v60 }
 0xf0f   :  { %1084 = vadd.xlane.f32.xlu0 %v1083_v10  ;;  %v1055_v47 = vmul.f32 %v1023_v42, %v1023_v42  ;;  %v1107_v57 = vsel %vm49_vm0, %v1049_v44, 0.0  ;;  %v966_v17 = vrot.slane %v2606_v45, 2  ;;  %v2737_v18 = vsub.f32 %v2234_v29, %v978_v35 }
 0xf10   :  { %v1026_v50 = vsub.f32 %v2674_v24, %v983_v48  ;;  %v1110_v61 = vsel %vm49_vm0, %v1050_v53, 0.0  ;;  %v1101_v16 = vsel %vm49_vm0, %v1047_v54, 0.0  ;;  %v1054_v6 = vmul.f32 %v1022_v52, %v1022_v52  ;;  %v2831_v53 = vld [vmem:[%s3121_s5] ss:$0 sm:$0xff] }
 0xf11   :  { %v982_v28 = vperm.slane %v966_v17, 0  ;;  %v1048_v3 = vmul.f32 %v2737_v18, %v2737_v18  ;;  %v970_v0 = vrot.slane %v2606_v45, 6  ;;  %v1051_v43 = vmul.f32 %v2646_v5, %v2646_v5 }
 0xf12   :  { %2154 = vmatmul.msk.f32.gmra.mxu0 %vm49_vm0, %v1006_v49  ;;  %v1125_v49 = vsel %vm49_vm0, %v1055_v47, 0.0  ;;  %v1058_v56 = vmul.f32 %v1026_v50, %v1026_v50  ;;  %v1122_v10 = vsel %vm49_vm0, %v1054_v6, 0.0  ;;  %vm137_vm3 = vcmask 1043459  }
 0xf13   :  { %v1024_v7 = vsub.f32 %v2674_v24, %v982_v28  ;;  %v1104_v14 = vsel %vm49_vm0, %v1048_v3, 0.0  ;;  %v1025_v11 = vsub.f32 %v2703_v36, %v982_v28  ;;  %v986_v25 = vperm.slane %v970_v0, 0 }
 0xf14   :  { %2168 = vmatmul.msk.f32.gmra.mxu1 %vm49_vm0, %v1020_v23  ;;  %v1134_v12 = vsel %vm49_vm0, %v1058_v56, 0.0  ;;  %v1113_v47 = vsel %vm49_vm0, %v1051_v43, 0.0 }
 0xf15   :  { %1090 = vadd.xlane.f32.xlu2 %v1089_v26  ;;  %1087 = vadd.xlane.f32.xlu1 %v1086_v27  ;;  %v1056_v22 = vmul.f32 %v1024_v7, %v1024_v7  ;;  %v1057_v23 = vmul.f32 %v1025_v11, %v1025_v11  ;;  %v1027_v26 = vsub.f32 %v2703_v36, %v983_v48 }
 0xf16   :  { %v1033_v15 = vsub.f32 %v2703_v36, %v986_v25 }
 0xf17   :  { %1093 = vadd.xlane.f32.xlu0 %v1092_v1  ;;  %v1128_v27 = vsel %vm49_vm0, %v1056_v22, 0.0  ;;  %v1131_v29 = vsel %vm49_vm0, %v1057_v23, 0.0  ;;  %v1059_v2 = vmul.f32 %v1027_v26, %v1027_v26 }
 0xf19   :  { %v1137_v35 = vsel %vm49_vm0, %v1059_v2, 0.0 }
 0xf1a   :  { %2155 = vmatmul.msk.f32.gmra.mxu0 %vm49_vm0, %v1007_v59 }
 0xf1c   :  { %2169 = vmatmul.msk.f32.gmra.mxu1 %vm49_vm0, %v1021_v37 }
 0xf1d   :  { %1099 = vadd.xlane.f32.xlu2 %v1098_v40  ;;  %1096 = vadd.xlane.f32.xlu1 %v1095_v38  ;;  %v971_v40 = vrot.slane %v2606_v45, 7 }
 0xf1f   :  { %1117 = vadd.xlane.f32.xlu0 %v1116_v41  ;;  %v1065_v41 = vmul.f32 %v1033_v15, %v1033_v15 }
 0xf21   :  { %v1155_v44 = vsel %vm49_vm0, %v1065_v41, 0.0 }
 0xf22   :  { %2156 = vmatmul.msk.f32.gmra.mxu0 %vm49_vm0, %v2621_v51  ;;  %v968_v51 = vrot.slane %v2606_v45, 4 }
 0xf24   :  { %2170 = vmatmul.msk.f32.gmra.mxu1 %vm49_vm0, %v1022_v52  ;;  %v984_v59 = vperm.slane %v968_v51, 0 }
 0xf25   :  { %1108 = vadd.xlane.f32.xlu2 %v1107_v57  ;;  %1120 = vadd.xlane.f32.xlu1 %v1119_v58  ;;  %v1559_v58 = vld [vmem:[%s3122_s6 + $0x10] sm:$0xff] }
 0xf26   :  { %v2741_v63 = vsub.f32 %v2703_v36, %v984_v59  ;;  %v1028_v31 = vsub.f32 %v2674_v24, %v984_v59 }
 0xf27   :  { %1126 = vadd.xlane.f32.xlu0 %v1125_v49  ;;  %v1557_v49 = vld [vmem:[%s3122_s6] sm:$0xff] }
 0xf28   :  { %v1061_v8 = vmul.f32 %v2741_v63, %v2741_v63  ;;  %v1060_v33 = vmul.f32 %v1028_v31, %v1028_v31 }
 0xf2a   :  { %2157 = vmatmul.msk.f32.gmra.mxu0 %vm49_vm0, %v2639_v62  ;;  %v969_v62 = vrot.slane %v2606_v45, 5  ;;  %v1143_v21 = vsel %vm49_vm0, %v1061_v8, 0.0  ;;  %v1140_v37 = vsel %vm49_vm0, %v1060_v33, 0.0 }
 0xf2c   :  { %2171 = vmatmul.msk.f32.gmra.mxu1 %vm49_vm0, %v1023_v42  ;;  %v985_v9 = vperm.slane %v969_v62, 0  ;;  %v987_v42 = vperm.slane %v971_v40, 0 }
 0xf2d   :  { %1111 = vadd.xlane.f32.xlu2 %v1110_v61  ;;  %1102 = vadd.xlane.f32.xlu1 %v1101_v16 }
 0xf2e   :  { %v1030_v55 = vsub.f32 %v2674_v24, %v985_v9  ;;  %v1034_v46 = vsub.f32 %v2674_v24, %v987_v42  ;;  %v1035_v52 = vsub.f32 %v2703_v36, %v987_v42 }
 0xf2f   :  { %1135 = vadd.xlane.f32.xlu0 %v1134_v12 }
 0xf30   :  { %v1066_v48 = vmul.f32 %v1034_v46, %v1034_v46 }
 0xf32   :  { %2158 = vmatmul.msk.f32.gmra.mxu0 %vm49_vm0, %v2659_v20  ;;  %v2757_v20 = vsub.f32 %v2703_v36, %v985_v9  ;;  %v1158_v5 = vsel %vm49_vm0, %v1066_v48, 0.0 }
 0xf34   :  { %2172 = vmatmul.msk.f32.gmra.mxu1 %vm49_vm0, %v1024_v7  ;;  %v1063_v4 = vmul.f32 %v2757_v20, %v2757_v20 }
 0xf35   :  { %1105 = vadd.xlane.f32.xlu1 %v1104_v14  ;;  %1123 = vadd.xlane.f32.xlu2 %v1122_v10 }
 0xf36   :  { %v1149_v1 = vsel %vm49_vm0, %v1063_v4, 0.0 }
 0xf37   :  { %1144 = vadd.xlane.f32.xlu0 %v1143_v21 }
 0xf3a   :  { %2159 = vmatmul.msk.f32.gmra.mxu0 %vm49_vm0, %v2656_v19  ;;  %v1032_v19 = vsub.f32 %v2674_v24, %v986_v25  ;;  %v2795_v24 = vpop.f32.mrf.mxu0 }
 0xf3c   :  { %2173 = vmatmul.msk.f32.gmra.mxu1 %vm49_vm0, %v1025_v11  ;;  %v1064_v34 = vmul.f32 %v1032_v19, %v1032_v19 }
 0xf3d   :  { %1129 = vadd.xlane.f32.xlu1 %v1128_v27  ;;  %1132 = vadd.xlane.f32.xlu2 %v1131_v29 }
 0xf3e   :  { %v1152_v38 = vsel %vm49_vm0, %v1064_v34, 0.0 }
 0xf3f   :  { %1150 = vadd.xlane.f32.xlu0 %v1149_v1 }
 0xf42   :  { %2160 = vmatmul.msk.f32.gmra.mxu0 %vm49_vm0, %v2664_v13  ;;  %v1062_v13 = vmul.f32 %v1030_v55, %v1030_v55  ;;  %v2801_v36 = vpop.f32.mrf.mxu0 }
 0xf44   :  { %2174 = vmatmul.msk.f32.gmra.mxu1 %vm49_vm0, %v1026_v50  ;;  %v1146_v45 = vsel %vm49_vm0, %v1062_v13, 0.0 }
 0xf45   :  { %1138 = vadd.xlane.f32.xlu1 %v1137_v35  ;;  %1141 = vadd.xlane.f32.xlu2 %v1140_v37 }
 0xf47   :  { %1153 = vadd.xlane.f32.xlu0 %v1152_v38 }
 0xf4a   :  { %2161 = vmatmul.msk.f32.gmra.mxu0 %vm49_vm0, %v2691_v32  ;;  %v1067_v32 = vmul.f32 %v1035_v52, %v1035_v52  ;;  %v2820_v50 = vpop.f32.mrf.mxu0 }
 0xf4c   :  { %2175 = vmatmul.msk.f32.gmra.mxu1 %vm49_vm0, %v1027_v26  ;;  %v1161_v57 = vsel %vm49_vm0, %v1067_v32, 0.0 }
 0xf4d   :  { %1156 = vadd.xlane.f32.xlu1 %v1155_v44  ;;  %1147 = vadd.xlane.f32.xlu2 %v1146_v45 }
 0xf4f   :  { %1114 = vadd.xlane.f32.xlu0 %v1113_v47 }
 0xf52   :  { %2162 = vmatmul.msk.f32.gmra.mxu0 %vm49_vm0, %v2686_v30  ;;  %v1560_v30 = vld [vmem:[%s3122_s6 + $0x18] sm:$0xff]  ;;  %v2825_v51 = vpop.f32.mrf.mxu0 }
 0xf53   :  { %1674 = vmatpush.msra.mxu2 %v1560_v30  ;;  %2219 = vmatpush.msrb.mxu3 %v1560_v30 }
 0xf54   :  { %2176 = vmatmul.msk.f32.gmra.mxu1 %vm49_vm0, %v1028_v31 }
 0xf55   :  { %1159 = vadd.xlane.f32.xlu1 %v1158_v5  ;;  %1162 = vadd.xlane.f32.xlu2 %v1161_v57 }
 0xf56   :  { %1675 = vmatpush.msra.mxu2 %v1559_v58  ;;  %2220 = vmatpush.msrb.mxu3 %v1559_v58 }
 0xf5a   :  { %2163 = vmatmul.msk.f32.gmra.mxu0 %vm49_vm0, %v2722_v60  ;;  %v1558_v60 = vld [vmem:[%s3122_s6 + $0x8] sm:$0xff] }
 0xf5b   :  { %1676 = vmatpush.msra.mxu2 %v1558_v60  ;;  %2221 = vmatpush.msrb.mxu3 %v1558_v60 }
 0xf5c   :  { %2177 = vmatmul.msk.f32.gmra.mxu1 %vm49_vm0, %v2741_v63 }
 0xf5d   :  { %1677 = vmatpush.msra.mxu2 %v1557_v49  ;;  %2222 = vmatpush.msrb.mxu3 %v1557_v49 }
 0xf62   :  { %2164 = vmatmul.msk.f32.gmra.mxu0 %vm49_vm0, %v2737_v18 }
 0xf64   :  { %2178 = vmatmul.msk.f32.gmra.mxu1 %vm49_vm0, %v1030_v55 }
 0xf6a   :  { %2165 = vmatmul.msk.f32.gmra.mxu0 %vm49_vm0, %v2709_v39 }
 0xf6c   :  { %2179 = vmatmul.msk.f32.gmra.mxu1 %vm49_vm0, %v2757_v20 }
 0xf74   :  { %2180 = vmatmul.msk.f32.gmra.mxu1 %vm49_vm0, %v1032_v19 }
 0xf7c   :  { %2181 = vmatmul.msk.f32.gmra.mxu1 %vm49_vm0, %v1033_v15 }
 0xf7f   :  { %v1361_v54 = vpop.f32.mrf.mxu0 }
 0xf80   :  { %v1457_v39 = vadd.f32 %v1361_v54, %v2795_v24 }
 0xf81   :  { %v2834_v56 = vpop.f32.mrf.mxu1 }
 0xf82   :  { %v1493_v17 = vadd.f32 %v2831_v53, %v1457_v39 }
 0xf84   :  { %v1525_v59 = vmax.f32 %v1493_v17, 0.0  ;;  %2182 = vmatmul.msk.f32.gmra.mxu1 %vm49_vm0, %v1034_v46 }
 0xf86   :  { %2184 = vmatmul.msk.f32.vlgmr.msra.gmra.mxu2 %vm1565_vm8, %v1525_v59 }
 0xf87   :  { %v1364_v61 = vpop.f32.mrf.mxu0 }
 0xf88   :  { %v1458_v16 = vadd.f32 %v1364_v61, %v2801_v36 }
 0xf89   :  { %v2840_v18 = vpop.f32.mrf.mxu1 }
 0xf8a   :  { %v1494_v12 = vadd.f32 %v2831_v53, %v1458_v16 }
 0xf8c   :  { %v1526_v28 = vmax.f32 %v1494_v12, 0.0  ;;  %2183 = vmatmul.msk.f32.gmra.mxu1 %vm49_vm0, %v1035_v52 }
 0xf8e   :  { %2185 = vmatmul.msk.f32.gmra.mxu2 %vm1565_vm8, %v1526_v28 }
 0xf8f   :  { %v1367_v63 = vpop.f32.mrf.mxu0 }
 0xf90   :  { %v1459_v62 = vadd.f32 %v1367_v63, %v2795_v24 }
 0xf91   :  { %v2846_v3 = vpop.f32.mrf.mxu1 }
 0xf92   :  { %v1495_v6 = vadd.f32 %v2831_v53, %v1459_v62 }
 0xf94   :  { %v1527_v7 = vmax.f32 %v1495_v6, 0.0 }
 0xf96   :  { %2186 = vmatmul.msk.f32.gmra.mxu2 %vm1565_vm8, %v1527_v7 }
 0xf97   :  { %v1370_v8 = vpop.f32.mrf.mxu0 }
 0xf98   :  { %v1460_v9 = vadd.f32 %v1370_v8, %v2801_v36 }
 0xf99   :  { %v1412_v14 = vpop.f32.mrf.mxu1 }
 0xf9a   :  { %v1496_v10 = vadd.f32 %v2831_v53, %v1460_v9  ;;  %v1474_v11 = vadd.f32 %v1412_v14, %v2825_v51 }
 0xf9c   :  { %v1528_v21 = vmax.f32 %v1496_v10, 0.0  ;;  %v1510_v20 = vadd.f32 %v2831_v53, %v1474_v11 }
 0xf9e   :  { %v1542_v0 = vmax.f32 %v1510_v20, 0.0  ;;  %2187 = vmatmul.msk.f32.gmra.mxu2 %vm1565_vm8, %v1528_v21 }
 0xf9f   :  { %v1373_v22 = vpop.f32.mrf.mxu0 }
 0xfa0   :  { %v1461_v23 = vadd.f32 %v1373_v22, %v2795_v24  ;;  %2201 = vmatmul.msk.f32.vlgmr.msrb.gmra.mxu3 %vm1565_vm8, %v1542_v0 }
 0xfa1   :  { %v1415_v4 = vpop.f32.mrf.mxu1 }
 0xfa2   :  { %v1497_v25 = vadd.f32 %v2831_v53, %v1461_v23  ;;  %v1475_v26 = vadd.f32 %v1415_v4, %v2820_v50 }
 0xfa4   :  { %v1529_v27 = vmax.f32 %v1497_v25, 0.0  ;;  %v1511_v29 = vadd.f32 %v2831_v53, %v1475_v26 }
 0xfa6   :  { %v1543_v31 = vmax.f32 %v1511_v29, 0.0  ;;  %2188 = vmatmul.msk.f32.gmra.mxu2 %vm1565_vm8, %v1529_v27 }
 0xfa7   :  { %v1376_v1 = vpop.f32.mrf.mxu0 }
 0xfa8   :  { %v1462_v19 = vadd.f32 %v1376_v1, %v2801_v36  ;;  %2202 = vmatmul.msk.f32.gmra.mxu3 %vm1565_vm8, %v1543_v31 }
 0xfa9   :  { %v1418_v2 = vpop.f32.mrf.mxu1 }
 0xfaa   :  { %v1498_v33 = vadd.f32 %v2831_v53, %v1462_v19  ;;  %v1476_v34 = vadd.f32 %v1418_v2, %v2825_v51 }
 0xfac   :  { %v1530_v35 = vmax.f32 %v1498_v33, 0.0  ;;  %v1512_v37 = vadd.f32 %v2831_v53, %v1476_v34 }
 0xfae   :  { %v1544_v15 = vmax.f32 %v1512_v37, 0.0  ;;  %2189 = vmatmul.msk.f32.gmra.mxu2 %vm1565_vm8, %v1530_v35 }
 0xfaf   :  { %v1379_v55 = vpop.f32.mrf.mxu0 }
 0xfb0   :  { %v1463_v40 = vadd.f32 %v1379_v55, %v2795_v24  ;;  %2203 = vmatmul.msk.f32.gmra.mxu3 %vm1565_vm8, %v1544_v15 }
 0xfb1   :  { %v1421_v38 = vpop.f32.mrf.mxu1 }
 0xfb2   :  { %v1499_v41 = vadd.f32 %v2831_v53, %v1463_v40  ;;  %v1477_v13 = vadd.f32 %v1421_v38, %v2820_v50 }
 0xfb4   :  { %v1531_v42 = vmax.f32 %v1499_v41, 0.0  ;;  %v1513_v43 = vadd.f32 %v2831_v53, %v1477_v13 }
 0xfb6   :  { %v1545_v44 = vmax.f32 %v1513_v43, 0.0  ;;  %2190 = vmatmul.msk.f32.gmra.mxu2 %vm1565_vm8, %v1531_v42  ;;  %v1471_v42 = vadd.f32 %v2834_v56, %v2795_v24 }
 0xfb7   :  { %v1382_v45 = vpop.f32.mrf.mxu0 }
 0xfb8   :  { %v1464_v46 = vadd.f32 %v1382_v45, %v2801_v36  ;;  %2204 = vmatmul.msk.f32.gmra.mxu3 %vm1565_vm8, %v1545_v44 }
 0xfb9   :  { %v1424_v52 = vpop.f32.mrf.mxu1 }
 0xfba   :  { %v1500_v47 = vadd.f32 %v2831_v53, %v1464_v46  ;;  %v1478_v48 = vadd.f32 %v1424_v52, %v2825_v51  ;;  %v1507_v46 = vadd.f32 %v2831_v53, %v1471_v42 }
 0xfbc   :  { %v1532_v32 = vmax.f32 %v1500_v47, 0.0  ;;  %v1514_v5 = vadd.f32 %v2831_v53, %v1478_v48  ;;  %v1539_v48 = vmax.f32 %v1507_v46, 0.0 }
 0xfbe   :  { %v1546_v57 = vmax.f32 %v1514_v5, 0.0  ;;  %2191 = vmatmul.msk.f32.gmra.mxu2 %vm1565_vm8, %v1532_v32  ;;  %v1472_v32 = vadd.f32 %v2840_v18, %v2801_v36 }
 0xfbf   :  { %v1385_v30 = vpop.f32.mrf.mxu0 }
 0xfc0   :  { %v1465_v58 = vadd.f32 %v1385_v30, %v2795_v24  ;;  %2205 = vmatmul.msk.f32.gmra.mxu3 %vm1565_vm8, %v1546_v57  ;;  %v1508_v57 = vadd.f32 %v2831_v53, %v1472_v32 }
 0xfc1   :  { %v1427_v60 = vpop.f32.mrf.mxu1 }
 0xfc2   :  { %v1501_v49 = vadd.f32 %v2831_v53, %v1465_v58  ;;  %v1479_v54 = vadd.f32 %v1427_v60, %v2820_v50  ;;  %v1070_v60 = vpop.xlane.xlu1 %1069 }
 0xfc3   :  { %vm1164_vm0 = vcmp.le.f32.partialorder %v1070_v60, 0.25 }
 0xfc4   :  { %v1533_v39 = vmax.f32 %v1501_v49, 0.0  ;;  %v1515_v17 = vadd.f32 %v2831_v53, %v1479_v54  ;;  %v1540_v49 = vmax.f32 %v1508_v57, 0.0  ;;  %v1473_v54 = vadd.f32 %v2846_v3, %v2820_v50  ;;  %v2942_v3 = vld [vmem:[%s3123_s7] ss:$0 sm:$0xff]  ;;  %s2265_s7 = smov [#allocation2]  }
 0xfc5   :  { %s2090_s17 = sshll.u32 %s2265_s7, 4  ;;  %s2091_s17 = int_to_ptr.vmem [resolvable:$true] %s2090_s17 }
 0xfc6   :  { %v1547_v59 = vmax.f32 %v1515_v17, 0.0  ;;  %2192 = vmatmul.msk.f32.gmra.mxu2 %vm1565_vm8, %v1533_v39  ;;  %v1509_v17 = vadd.f32 %v2831_v53, %v1473_v54 }
 0xfc7   :  { %v1388_v61 = vpop.f32.mrf.mxu0 }
 0xfc8   :  { %v1466_v16 = vadd.f32 %v1388_v61, %v2801_v36  ;;  %2206 = vmatmul.msk.f32.gmra.mxu3 %vm1565_vm8, %v1547_v59 }
 0xfc9   :  { %v1430_v12 = vpop.f32.mrf.mxu1 }
 0xfca   :  { %v1502_v28 = vadd.f32 %v2831_v53, %v1466_v16  ;;  %v1480_v63 = vadd.f32 %v1430_v12, %v2825_v51  ;;  %v1541_v16 = vmax.f32 %v1509_v17, 0.0 }
 0xfcc   :  { %v1534_v62 = vmax.f32 %v1502_v28, 0.0  ;;  %v1516_v6 = vadd.f32 %v2831_v53, %v1480_v63  ;;  %v1079_v28 = vpop.xlane.xlu1 %1078 }
 0xfcd   :  { %vm1167_vm11 = vcmp.le.f32.partialorder %v1079_v28, 0.25 }
 0xfce   :  { %v1548_v7 = vmax.f32 %v1516_v6, 0.0  ;;  %2193 = vmatmul.msk.f32.gmra.mxu2 %vm1565_vm8, %v1534_v62 }
 0xfcf   :  { %v1391_v8 = vpop.f32.mrf.mxu0 }
 0xfd0   :  { %v1467_v9 = vadd.f32 %v1391_v8, %v2795_v24  ;;  %2207 = vmatmul.msk.f32.gmra.mxu3 %vm1565_vm8, %v1548_v7  ;;  %v1076_v8 = vpop.xlane.xlu0 %1075 }
 0xfd1   :  { %v1433_v14 = vpop.f32.mrf.mxu1  ;;  %vm1166_vm10 = vcmp.le.f32.partialorder %v1076_v8, 0.25 }
 0xfd2   :  { %v1503_v10 = vadd.f32 %v2831_v53, %v1467_v9  ;;  %v1481_v11 = vadd.f32 %v1433_v14, %v2820_v50 }
 0xfd4   :  { %v1535_v21 = vmax.f32 %v1503_v10, 0.0  ;;  %v1517_v20 = vadd.f32 %v2831_v53, %v1481_v11  ;;  %v2949_v11 = vpop.xlane.xlu1 %1087 }
 0xfd5   :  { %vm1170_vm1 = vcmp.le.f32.partialorder %v2949_v11, 0.25 }
 0xfd6   :  { %v1549_v0 = vmax.f32 %v1517_v20, 0.0  ;;  %2194 = vmatmul.msk.f32.gmra.mxu2 %vm1565_vm8, %v1535_v21 }
 0xfd7   :  { %v1394_v22 = vpop.f32.mrf.mxu0 }
 0xfd8   :  { %v1468_v23 = vadd.f32 %v1394_v22, %v2801_v36  ;;  %2208 = vmatmul.msk.f32.gmra.mxu3 %vm1565_vm8, %v1549_v0 }
 0xfd9   :  { %v1436_v4 = vpop.f32.mrf.mxu1 }
 0xfda   :  { %v1504_v25 = vadd.f32 %v2831_v53, %v1468_v23  ;;  %v1482_v26 = vadd.f32 %v1436_v4, %v2825_v51 }
 0xfdc   :  { %v1536_v27 = vmax.f32 %v1504_v25, 0.0  ;;  %v1518_v29 = vadd.f32 %v2831_v53, %v1482_v26 }
 0xfde   :  { %v1550_v31 = vmax.f32 %v1518_v29, 0.0  ;;  %2195 = vmatmul.msk.f32.gmra.mxu2 %vm1565_vm8, %v1536_v27 }
 0xfdf   :  { %v1397_v1 = vpop.f32.mrf.mxu0 }
 0xfe0   :  { %v1469_v19 = vadd.f32 %v1397_v1, %v2795_v24  ;;  %2209 = vmatmul.msk.f32.gmra.mxu3 %vm1565_vm8, %v1550_v31  ;;  %v1073_v24 = vpop.xlane.xlu2 %1072  ;;  %v2957_v31 = vpop.xlane.xlu1 %1096 }
 0xfe1   :  { %v1439_v2 = vpop.f32.mrf.mxu1  ;;  %vm1165_vm9 = vcmp.le.f32.partialorder %v1073_v24, 0.25 }
 0xfe2   :  { %v1505_v33 = vadd.f32 %v2831_v53, %v1469_v19  ;;  %v1483_v34 = vadd.f32 %v1439_v2, %v2820_v50 }
 0xfe4   :  { %v1537_v35 = vmax.f32 %v1505_v33, 0.0  ;;  %v1519_v37 = vadd.f32 %v2831_v53, %v1483_v34 }
 0xfe6   :  { %v1551_v15 = vmax.f32 %v1519_v37, 0.0  ;;  %2196 = vmatmul.msk.f32.gmra.mxu2 %vm1565_vm8, %v1537_v35 }
 0xfe7   :  { %v1400_v55 = vpop.f32.mrf.mxu0 }
 0xfe8   :  { %v1470_v40 = vadd.f32 %v1400_v55, %v2801_v36  ;;  %2210 = vmatmul.msk.f32.gmra.mxu3 %vm1565_vm8, %v1551_v15  ;;  %v2931_v39 = vpop.xlane.xlu2 %1081 }
 0xfe9   :  { %v1442_v38 = vpop.f32.mrf.mxu1  ;;  %vm1168_vm12 = vcmp.le.f32.partialorder %v2931_v39, 0.25 }
 0xfea   :  { %v1506_v41 = vadd.f32 %v2831_v53, %v1470_v40  ;;  %v1484_v13 = vadd.f32 %v1442_v38, %v2825_v51  ;;  %v2967_v38 = vpop.xlane.xlu1 %1120 }
 0xfec   :  { %v1538_v43 = vmax.f32 %v1506_v41, 0.0  ;;  %v1520_v44 = vadd.f32 %v2831_v53, %v1484_v13 }
 0xfee   :  { %v1552_v45 = vmax.f32 %v1520_v44, 0.0  ;;  %2197 = vmatmul.msk.f32.gmra.mxu2 %vm1565_vm8, %v1538_v43 }
 0xff0   :  { %2211 = vmatmul.msk.f32.gmra.mxu3 %vm1565_vm8, %v1552_v45  ;;  %v2944_v7 = vpop.xlane.xlu2 %1090 }
 0xff1   :  { %v1445_v52 = vpop.f32.mrf.mxu1  ;;  %vm1171_vm2 = vcmp.le.f32.partialorder %v2944_v7, 0.25 }
 0xff2   :  { %v1485_v47 = vadd.f32 %v1445_v52, %v2820_v50  ;;  %v2976_v57 = vpop.xlane.xlu1 %1102 }
 0xff4   :  { %v1521_v5 = vadd.f32 %v2831_v53, %v1485_v47 }
 0xff6   :  { %v1553_v56 = vmax.f32 %v1521_v5, 0.0  ;;  %2198 = vmatmul.msk.f32.gmra.mxu2 %vm1565_vm8, %v1539_v48 }
 0xff8   :  { %2212 = vmatmul.msk.f32.gmra.mxu3 %vm1565_vm8, %v1553_v56  ;;  %v2953_v22 = vpop.xlane.xlu2 %1099 }
 0xff9   :  { %v1448_v30 = vpop.f32.mrf.mxu1 }
 0xffa   :  { %v1486_v58 = vadd.f32 %v1448_v30, %v2825_v51 }
 0xffc   :  { %v1522_v36 = vadd.f32 %v2831_v53, %v1486_v58 }
 0xffe   :  { %v1554_v18 = vmax.f32 %v1522_v36, 0.0  ;;  %2199 = vmatmul.msk.f32.gmra.mxu2 %vm1565_vm8, %v1540_v49 }
0x1000   :  { %2213 = vmatmul.msk.f32.gmra.mxu3 %vm1565_vm8, %v1554_v18  ;;  %v2960_v2 = vpop.xlane.xlu2 %1108 }
0x1001   :  { %v1451_v59 = vpop.f32.mrf.mxu1 }
0x1002   :  { %v1487_v61 = vadd.f32 %v1451_v59, %v2820_v50 }
0x1004   :  { %v1523_v12 = vadd.f32 %v2831_v53, %v1487_v61 }
0x1006   :  { %v1555_v63 = vmax.f32 %v1523_v12, 0.0  ;;  %2200 = vmatmul.msk.f32.gmra.mxu2 %vm1565_vm8, %v1541_v16 }
0x1008   :  { %2214 = vmatmul.msk.f32.gmra.mxu3 %vm1565_vm8, %v1555_v63  ;;  %v2971_v45 = vpop.xlane.xlu2 %1111 }
0x1009   :  { %v1454_v62 = vpop.f32.mrf.mxu1  ;;  %v1679_v6 = vpop.f32.mrf.mxu2 }
0x100a   :  { %v1488_v50 = vadd.f32 %v1454_v62, %v2825_v51  ;;  %v1680_v14 = vadd.f32 %v2942_v3, %v1679_v6  ;;  %v1085_v51 = vpop.xlane.xlu0 %1084 }
0x100b   :  { %vm1169_vm13 = vcmp.le.f32.partialorder %v1085_v51, 0.25 }
0x100c   :  { %v1524_v9 = vadd.f32 %v2831_v53, %v1488_v50  ;;  %v1775_v21 = vmax.f32 %v1680_v14, 0.0 }
0x100e   :  { %v1556_v10 = vmax.f32 %v1524_v9, 0.0  ;;  %v1871_v23 = vsel %vm1164_vm0, %v1775_v21, -1e+30  ;;  %vm1173_vm0 = vcmp.le.f32.partialorder %v2957_v31, 0.25 }
0x100f   :  { %v1903_v53 = vsel %vm1565_vm8, %v1871_v23, -inf }
0x1010   :  { %2215 = vmatmul.msk.f32.gmra.mxu3 %vm1565_vm8, %v1556_v10  ;;  %v1124_v18 = vpop.xlane.xlu2 %1123 }
0x1011   :  { %v1682_v20 = vpop.f32.mrf.mxu2  ;;  %vm1182_vm14 = vcmp.le.f32.partialorder %v1124_v18, 0.25 }
0x1012   :  { %v1683_v0 = vadd.f32 %v2942_v3, %v1682_v20  ;;  %v2962_v35 = vpop.xlane.xlu0 %1093  ;;  %v2985_v20 = vpop.xlane.xlu1 %1105 }
0x1014   :  { %v1776_v4 = vmax.f32 %v1683_v0, 0.0 }
0x1016   :  { %v1872_v25 = vsel %vm1165_vm9, %v1776_v4, -1e+30  ;;  %vm1175_vm9 = vcmp.le.f32.partialorder %v2976_v57, 0.25 }
0x1017   :  { %v1904_v26 = vsel %vm1565_vm8, %v1872_v25, -inf }
0x1018   :  { %v1905_v27 = vmax.f32 %v1903_v53, %v1904_v26 }
0x1019   :  { %v1685_v29 = vpop.f32.mrf.mxu2 }
0x101a   :  { %v1686_v1 = vadd.f32 %v2942_v3, %v1685_v29  ;;  %v1906_v34 = vrot.slane %v1905_v27, 4  ;;  %v2973_v47 = vpop.xlane.xlu0 %1117 }
0x101c   :  { %v1777_v19 = vmax.f32 %v1686_v1, 0.0  ;;  %v1907_v55 = vmax.f32 %v1905_v27, %v1906_v34 }
0x101e   :  { %v1873_v33 = vsel %vm1166_vm10, %v1777_v19, -1e+30  ;;  %v1908_v42 = vrot.slane %v1907_v55, 2  ;;  %vm1172_vm10 = vcmp.le.f32.partialorder %v2962_v35, 0.25 }
0x101f   :  { %v1912_v43 = vsel %vm1565_vm8, %v1873_v33, -inf }
0x1020   :  { %v1909_v32 = vmax.f32 %v1907_v55, %v1908_v42  ;;  %v1130_v55 = vpop.xlane.xlu1 %1129 }
0x1021   :  { %v1688_v37 = vpop.f32.mrf.mxu2  ;;  %vm1184_vm6 = vcmp.le.f32.partialorder %v1130_v55, 0.25 }
0x1022   :  { %v1689_v15 = vadd.f32 %v2942_v3, %v1688_v37  ;;  %v1910_v60 = vrot.slane %v1909_v32, 1  ;;  %v1127_v28 = vpop.xlane.xlu0 %1126 }
0x1023   :  { %v2965_v40 = vpop.f32.mrf.mxu3  ;;  %vm1183_vm15 = vcmp.le.f32.partialorder %v1127_v28, 0.25 }
0x1024   :  { %v1778_v41 = vmax.f32 %v1689_v15, 0.0  ;;  %v1911_v16 = vmax.f32 %v1909_v32, %v1910_v60 }
0x1026   :  { %v1874_v13 = vsel %vm1167_vm11, %v1778_v41, -1e+30  ;;  %vm1174_vm11 = vcmp.le.f32.partialorder %v2953_v22, 0.25 }
0x1027   :  { %v1913_v44 = vsel %vm1565_vm8, %v1874_v13, -inf }
0x1028   :  { %v1914_v46 = vmax.f32 %v1912_v43, %v1913_v44  ;;  %v1133_v44 = vpop.xlane.xlu2 %1132 }
0x1029   :  { %v1691_v52 = vpop.f32.mrf.mxu2  ;;  %vm1185_vm7 = vcmp.le.f32.partialorder %v1133_v44, 0.25 }
0x102a   :  { %v1915_v48 = vrot.slane %v1914_v46, 4  ;;  %v1692_v56 = vadd.f32 %v2942_v3, %v1691_v52 }
0x102b   :  { %v1733_v5 = vpop.f32.mrf.mxu3 }
0x102c   :  { %v1916_v24 = vmax.f32 %v1914_v46, %v1915_v48  ;;  %v1734_v58 = vadd.f32 %v2942_v3, %v1733_v5  ;;  %v1779_v54 = vmax.f32 %v1692_v56, 0.0 }
0x102e   :  { %v1917_v30 = vrot.slane %v1916_v24, 2  ;;  %v1793_v59 = vmax.f32 %v1734_v58, 0.0  ;;  %v1875_v62 = vsel %vm1168_vm12, %v1779_v54, -1e+30  ;;  %vm1176_vm12 = vcmp.le.f32.partialorder %v2985_v20, 0.25 }
0x102f   :  { %v1921_v21 = vsel %vm1565_vm8, %v1875_v62, -inf  ;;  %v3004_v62 = vpop.xlane.xlu0 %1135 }
0x1030   :  { %v1918_v49 = vmax.f32 %v1916_v24, %v1917_v30  ;;  %v1889_v9 = vsel %vm1182_vm14, %v1793_v59, -1e+30  ;;  %vm1181_vm14 = vcmp.le.f32.partialorder %v2967_v38, 0.25 }
0x1031   :  { %v1694_v36 = vpop.f32.mrf.mxu2  ;;  %v1984_v4 = vsel %vm1565_vm8, %v1889_v9, -inf }
0x1032   :  { %v1919_v17 = vrot.slane %v1918_v49, 1  ;;  %v1695_v61 = vadd.f32 %v2942_v3, %v1694_v36 }
0x1033   :  { %v1736_v12 = vpop.f32.mrf.mxu3 }
0x1034   :  { %v1920_v63 = vmax.f32 %v1918_v49, %v1919_v17  ;;  %v1780_v6 = vmax.f32 %v1695_v61, 0.0  ;;  %v1737_v50 = vadd.f32 %v2942_v3, %v1736_v12 }
0x1036   :  { %v2063_v8 = vsel %vm134_vm4, %v1920_v63, %v1911_v16  ;;  %v1876_v14 = vsel %vm1169_vm13, %v1780_v6, -1e+30  ;;  %v1794_v10 = vmax.f32 %v1737_v50, 0.0  ;;  %vm1177_vm13 = vcmp.le.f32.partialorder %v2960_v2, 0.25 }
0x1037   :  { %v1922_v39 = vsel %vm1565_vm8, %v1876_v14, -inf }
0x1038   :  { %v1923_v0 = vmax.f32 %v1921_v21, %v1922_v39  ;;  %v1890_v23 = vsel %vm1183_vm15, %v1794_v10, -1e+30  ;;  %v3009_v10 = vpop.xlane.xlu0 %1144  ;;  %vm1186_vm15 = vcmp.le.f32.partialorder %v3004_v62, 0.25 }
0x1039   :  { %v1985_v25 = vsel %vm1565_vm8, %v1890_v23, -inf  ;;  %v1697_v51 = vpop.f32.mrf.mxu2 }
0x103a   :  { %v1924_v53 = vrot.slane %v1923_v0, 4  ;;  %v2989_v26 = vmax.f32 %v1984_v4, %v1985_v25  ;;  %v1698_v1 = vadd.f32 %v2942_v3, %v1697_v51 }
0x103b   :  { %v1739_v27 = vpop.f32.mrf.mxu3 }
0x103c   :  { %v1925_v29 = vmax.f32 %v1923_v0, %v1924_v53  ;;  %v1740_v33 = vadd.f32 %v2942_v3, %v1739_v27  ;;  %v1781_v37 = vmax.f32 %v1698_v1, 0.0 }
0x103e   :  { %v1926_v19 = vrot.slane %v1925_v29, 2  ;;  %v1795_v13 = vmax.f32 %v1740_v33, 0.0  ;;  %v1877_v52 = vsel %vm1170_vm1, %v1781_v37, -1e+30  ;;  %vm1189_vm1 = vcmp.le.f32.partialorder %v3009_v10, 0.25 }
0x103f   :  { %v1930_v58 = vsel %vm1565_vm8, %v1877_v52, -inf }
0x1040   :  { %v1927_v34 = vmax.f32 %v1925_v29, %v1926_v19  ;;  %v1891_v24 = vsel %vm1184_vm6, %v1795_v13, -1e+30  ;;  %v3011_v0 = vpop.xlane.xlu0 %1150  ;;  %vm1178_vm6 = vcmp.le.f32.partialorder %v2971_v45, 0.25 }
0x1041   :  { %v1700_v15 = vpop.f32.mrf.mxu2  ;;  %v1993_v54 = vsel %vm1565_vm8, %v1891_v24, -inf }
0x1042   :  { %v1928_v41 = vrot.slane %v1927_v34, 1  ;;  %v1701_v42 = vadd.f32 %v2942_v3, %v1700_v15 }
0x1043   :  { %v1742_v43 = vpop.f32.mrf.mxu3 }
0x1044   :  { %v1929_v46 = vmax.f32 %v1927_v34, %v1928_v41  ;;  %v1782_v48 = vmax.f32 %v1701_v42, 0.0  ;;  %v1743_v32 = vadd.f32 %v2942_v3, %v1742_v43  ;;  %v3019_v34 = vpop.xlane.xlu2 %1141  ;;  %v1139_v42 = vpop.xlane.xlu1 %1138 }
0x1046   :  { %v2064_v5 = vsel %vm135_vm5, %v1929_v46, %v2063_v8  ;;  %v1878_v56 = vsel %vm1171_vm2, %v1782_v48, -1e+30  ;;  %v1796_v30 = vmax.f32 %v1743_v32, 0.0  ;;  %v1731_v32 = vadd.f32 %v2942_v3, %v2965_v40 }
0x1047   :  { %v1931_v11 = vsel %vm1565_vm8, %v1878_v56, -inf  ;;  %vm1191_vm2 = vcmp.le.f32.partialorder %v3011_v0, 0.25 }
0x1048   :  { %v1932_v60 = vmax.f32 %v1930_v58, %v1931_v11  ;;  %v1892_v49 = vsel %vm1185_vm7, %v1796_v30, -1e+30  ;;  %v3022_v15 = vpop.xlane.xlu0 %1153  ;;  %vm1187_vm7 = vcmp.le.f32.partialorder %v1139_v42, 0.25 }
0x1049   :  { %v1994_v36 = vsel %vm1565_vm8, %v1892_v49, -inf  ;;  %v1703_v18 = vpop.f32.mrf.mxu2  ;;  %v1792_v49 = vmax.f32 %v1731_v32, 0.0 }
0x104a   :  { %v1933_v17 = vrot.slane %v1932_v60, 4  ;;  %v3002_v7 = vmax.f32 %v1993_v54, %v1994_v36  ;;  %v1704_v51 = vadd.f32 %v2942_v3, %v1703_v18 }
0x104b   :  { %v1745_v59 = vpop.f32.mrf.mxu3 }
0x104c   :  { %v1934_v61 = vmax.f32 %v1932_v60, %v1933_v17  ;;  %v1783_v33 = vmax.f32 %v1704_v51, 0.0  ;;  %v1746_v22 = vadd.f32 %v2942_v3, %v1745_v59  ;;  %v1148_v18 = vpop.xlane.xlu2 %1147  ;;  %v1996_v42 = vrot.slane %v3002_v7, 4 }
0x104e   :  { %v1935_v16 = vrot.slane %v1934_v61, 2  ;;  %v1879_v46 = vsel %vm1172_vm10, %v1783_v33, -1e+30  ;;  %v1797_v17 = vmax.f32 %v1746_v22, 0.0 }
0x104f   :  { %v1939_v24 = vsel %vm1565_vm8, %v1879_v46, -inf }
0x1050   :  { %v1936_v12 = vmax.f32 %v1934_v61, %v1935_v16  ;;  %v1115_v59 = vpop.xlane.xlu0 %1114 }
0x1051   :  { %v1706_v28 = vpop.f32.mrf.mxu2  ;;  %vm1179_vm10 = vcmp.le.f32.partialorder %v1115_v59, 0.25 }
0x1052   :  { %v1937_v63 = vrot.slane %v1936_v12, 1  ;;  %v1707_v23 = vadd.f32 %v2942_v3, %v1706_v28 }
0x1053   :  { %v1748_v6 = vpop.f32.mrf.mxu3 }
0x1054   :  { %v1938_v50 = vmax.f32 %v1936_v12, %v1937_v63  ;;  %v1784_v29 = vmax.f32 %v1707_v23, 0.0  ;;  %v1749_v20 = vadd.f32 %v2942_v3, %v1748_v6  ;;  %v1157_v6 = vpop.xlane.xlu1 %1156  ;;  %v1987_v23 = vrot.slane %v2989_v26, 4 }
0x1056   :  { %v3007_v8 = vsel %vm137_vm3, %v1938_v50, %v2064_v5  ;;  %v1880_v55 = vsel %vm1173_vm0, %v1784_v29, -1e+30  ;;  %v1798_v16 = vmax.f32 %v1749_v20, 0.0  ;;  %vm1188_vm0 = vcmp.le.f32.partialorder %v3019_v34, 0.25 }
0x1057   :  { %v1940_v52 = vsel %vm1565_vm8, %v1880_v55, -inf }
0x1058   :  { %v1941_v30 = vmax.f32 %v1939_v24, %v1940_v52 }
0x1059   :  { %v1709_v9 = vpop.f32.mrf.mxu2 }
0x105a   :  { %v1710_v27 = vadd.f32 %v2942_v3, %v1709_v9  ;;  %v1942_v61 = vrot.slane %v1941_v30, 4 }
0x105b   :  { %v1751_v14 = vpop.f32.mrf.mxu3 }
0x105c   :  { %v1785_v37 = vmax.f32 %v1710_v27, 0.0  ;;  %v1752_v12 = vadd.f32 %v2942_v3, %v1751_v14  ;;  %v1893_v14 = vsel %vm1186_vm15, %v1797_v17, -1e+30  ;;  %v1943_v51 = vmax.f32 %v1941_v30, %v1942_v61 }
0x105d   :  { %v1894_v27 = vsel %vm1187_vm7, %v1798_v16, -1e+30 }
0x105e   :  { %v1881_v57 = vsel %vm1174_vm11, %v1785_v37, -1e+30  ;;  %vm1193_vm11 = vcmp.le.f32.partialorder %v1157_v6, 0.25  ;;  %v1799_v29 = vmax.f32 %v1752_v12, 0.0  ;;  %v1988_v37 = vmax.f32 %v2989_v26, %v1987_v23  ;;  %v1160_v12 = vpop.xlane.xlu1 %1159 }
0x105f   :  { %v1948_v58 = vsel %vm1565_vm8, %v1881_v57, -inf  ;;  %vm1194_vm15 = vcmp.le.f32.partialorder %v1160_v12, 0.25 }
0x1060   :  { %v1895_v10 = vsel %vm1188_vm0, %v1799_v29, -1e+30 }
0x1061   :  { %v1712_v21 = vpop.f32.mrf.mxu2  ;;  %v2011_v30 = vsel %vm1565_vm8, %v1895_v10, -inf }
0x1062   :  { %v1713_v25 = vadd.f32 %v2942_v3, %v1712_v21 }
0x1063   :  { %v1754_v39 = vpop.f32.mrf.mxu3 }
0x1064   :  { %v1786_v19 = vmax.f32 %v1713_v25, 0.0  ;;  %v1755_v2 = vadd.f32 %v2942_v3, %v1754_v39  ;;  %v1888_v39 = vsel %vm1181_vm14, %v1792_v49, -1e+30  ;;  %vm139_vm14 = vcmask 1044484  }
0x1065   :  { %v3057_v38 = vsel %vm1565_vm8, %v1888_v39, -inf }
0x1066   :  { %v1882_v43 = vsel %vm1175_vm9, %v1786_v19, -1e+30  ;;  %v1800_v9 = vmax.f32 %v1755_v2, 0.0  ;;  %vm1190_vm9 = vcmp.le.f32.partialorder %v1148_v18, 0.25 }
0x1067   :  { %v1949_v35 = vsel %vm1565_vm8, %v1882_v43, -inf  ;;  %v2002_v43 = vsel %vm1565_vm8, %v1893_v14, -inf }
0x1068   :  { %v1950_v60 = vmax.f32 %v1948_v58, %v1949_v35 }
0x1069   :  { %v1715_v4 = vpop.f32.mrf.mxu2 }
0x106a   :  { %v1716_v1 = vadd.f32 %v2942_v3, %v1715_v4  ;;  %v1951_v50 = vrot.slane %v1950_v60, 4 }
0x106b   :  { %v1757_v53 = vpop.f32.mrf.mxu3 }
0x106c   :  { %v1787_v41 = vmax.f32 %v1716_v1, 0.0  ;;  %v1758_v4 = vadd.f32 %v2942_v3, %v1757_v53  ;;  %v1952_v19 = vmax.f32 %v1950_v60, %v1951_v50  ;;  %v1896_v53 = vsel %vm1189_vm1, %v1800_v9, -1e+30 }
0x106d   :  { %v2012_v52 = vsel %vm1565_vm8, %v1896_v53, -inf  ;;  %vm141_vm1 = vcmask 1045509  }
0x106e   :  { %v1883_v5 = vsel %vm1176_vm12, %v1787_v41, -1e+30  ;;  %vm1192_vm12 = vcmp.le.f32.partialorder %v3022_v15, 0.25  ;;  %v1801_v55 = vmax.f32 %v1758_v4, 0.0  ;;  %v2013_v45 = vmax.f32 %v2011_v30, %v2012_v52 }
0x106f   :  { %v1957_v40 = vsel %vm1565_vm8, %v1883_v5, -inf }
0x1070   :  { %v1897_v22 = vsel %vm1190_vm9, %v1801_v55, -1e+30  ;;  %v2014_v6 = vrot.slane %v2013_v45, 4 }
0x1071   :  { %v1718_v13 = vpop.f32.mrf.mxu2  ;;  %v2020_v49 = vsel %vm1565_vm8, %v1897_v22, -inf }
0x1072   :  { %v1719_v44 = vadd.f32 %v2942_v3, %v1718_v13 }
0x1073   :  { %v1760_v31 = vpop.f32.mrf.mxu3 }
0x1074   :  { %v1788_v48 = vmax.f32 %v1719_v44, 0.0  ;;  %v1761_v28 = vadd.f32 %v2942_v3, %v1760_v31  ;;  %v2003_v44 = vsel %vm1565_vm8, %v1894_v27, -inf  ;;  %v1944_v31 = vrot.slane %v1943_v51, 2 }
0x1075   :  { %v2004_v24 = vmax.f32 %v2002_v43, %v2003_v44 }
0x1076   :  { %v1884_v56 = vsel %vm1177_vm13, %v1788_v48, -1e+30  ;;  %v1802_v1 = vmax.f32 %v1761_v28, 0.0  ;;  %v1953_v48 = vrot.slane %v1952_v19, 2  ;;  %vm1180_vm13 = vcmp.le.f32.partialorder %v2973_v47, 0.25 }
0x1077   :  { %v1958_v11 = vsel %vm1565_vm8, %v1884_v56, -inf  ;;  %v2005_v18 = vrot.slane %v2004_v24, 4  ;;  %v1989_v28 = vrot.slane %v1988_v37, 2 }
0x1078   :  { %v1959_v54 = vmax.f32 %v1957_v40, %v1958_v11  ;;  %v1898_v26 = vsel %vm1191_vm2, %v1802_v1, -1e+30  ;;  %v1945_v11 = vmax.f32 %v1943_v51, %v1944_v31  ;;  %v1954_v40 = vmax.f32 %v1952_v19, %v1953_v48 }
0x1079   :  { %v1721_v36 = vpop.f32.mrf.mxu2  ;;  %v2021_v0 = vsel %vm1565_vm8, %v1898_v26, -inf  ;;  %v2006_v51 = vmax.f32 %v2004_v24, %v2005_v18  ;;  %v1990_v19 = vmax.f32 %v1988_v37, %v1989_v28  ;;  %vm143_vm2 = vcmask 1046534  }
0x107a   :  { %v1722_v21 = vadd.f32 %v2942_v3, %v1721_v36  ;;  %v1960_v25 = vrot.slane %v1959_v54, 4  ;;  %v2022_v61 = vmax.f32 %v2020_v49, %v2021_v0  ;;  %v1946_v39 = vrot.slane %v1945_v11, 1 }
0x107b   :  { %v1763_v63 = vpop.f32.mrf.mxu3  ;;  %v1955_v4 = vrot.slane %v1954_v40, 1 }
0x107c   :  { %v1789_v33 = vmax.f32 %v1722_v21, 0.0  ;;  %v1961_v62 = vmax.f32 %v1959_v54, %v1960_v25  ;;  %v1764_v41 = vadd.f32 %v2942_v3, %v1763_v63  ;;  %v1997_v21 = vmax.f32 %v3002_v7, %v1996_v42 }
0x107d   :  { %v2023_v29 = vrot.slane %v2022_v61, 4  ;;  %v1956_v42 = vmax.f32 %v1954_v40, %v1955_v4 }
0x107e   :  { %v1885_v32 = vsel %vm1178_vm6, %v1789_v33, -1e+30  ;;  %v1962_v34 = vrot.slane %v1961_v62, 2  ;;  %v1803_v56 = vmax.f32 %v1764_v41, 0.0  ;;  %v1998_v55 = vrot.slane %v1997_v21, 2 }
0x107f   :  { %v1966_v60 = vsel %vm1565_vm8, %v1885_v32, -inf  ;;  %v2015_v41 = vmax.f32 %v2013_v45, %v2014_v6  ;;  %v2024_v10 = vmax.f32 %v2022_v61, %v2023_v29  ;;  %vm145_vm6 = vcmask 1047559  }
0x1080   :  { %v1963_v17 = vmax.f32 %v1961_v62, %v1962_v34  ;;  %v1899_v59 = vsel %vm1192_vm12, %v1803_v56, -1e+30  ;;  %v1947_v62 = vmax.f32 %v1945_v11, %v1946_v39 }
0x1081   :  { %v1724_v13 = vpop.f32.mrf.mxu2  ;;  %v2029_v25 = vsel %vm1565_vm8, %v1899_v59, -inf  ;;  %v2016_v32 = vrot.slane %v2015_v41, 2  ;;  %v2025_v30 = vrot.slane %v2024_v10, 2 }
0x1082   :  { %v1725_v46 = vadd.f32 %v2942_v3, %v1724_v13  ;;  %v1964_v27 = vrot.slane %v1963_v17, 1  ;;  %v2066_v48 = vsel %vm139_vm14, %v1947_v62, %v3007_v8 }
0x1083   :  { %v1766_v57 = vpop.f32.mrf.mxu3  ;;  %v2067_v24 = vsel %vm141_vm1, %v1956_v42, %v2066_v48  ;;  %v2026_v61 = vmax.f32 %v2024_v10, %v2025_v30 }
0x1084   :  { %v1790_v35 = vmax.f32 %v1725_v46, 0.0  ;;  %v1767_v5 = vadd.f32 %v2942_v3, %v1766_v57  ;;  %v2007_v46 = vrot.slane %v2006_v51, 2  ;;  %v1965_v31 = vmax.f32 %v1963_v17, %v1964_v27 }
0x1085   :  { %v1999_v57 = vmax.f32 %v1997_v21, %v1998_v55  ;;  %v2027_v6 = vrot.slane %v2026_v61, 1 }
0x1086   :  { %v1886_v20 = vsel %vm1179_vm10, %v1790_v35, -1e+30  ;;  %v1804_v58 = vmax.f32 %v1767_v5, 0.0  ;;  %v1163_v5 = vpop.xlane.xlu2 %1162  ;;  %v2008_v56 = vmax.f32 %v2006_v51, %v2007_v46 }
0x1087   :  { %v1967_v2 = vsel %vm1565_vm8, %v1886_v20, -inf  ;;  %v2068_v20 = vsel %vm143_vm2, %v1965_v31, %v2067_v24  ;;  %vm1195_vm7 = vcmp.le.f32.partialorder %v1163_v5, 0.25 }
0x1088   :  { %v1968_v54 = vmax.f32 %v1966_v60, %v1967_v2  ;;  %v1900_v36 = vsel %vm1193_vm11, %v1804_v58, -1e+30  ;;  %v2017_v60 = vmax.f32 %v2015_v41, %v2016_v32  ;;  %v1991_v2 = vrot.slane %v1990_v19, 1 }
0x1089   :  { %v1727_v16 = vpop.f32.mrf.mxu2  ;;  %v2030_v50 = vsel %vm1565_vm8, %v1900_v36, -inf  ;;  %v2009_v17 = vrot.slane %v2008_v56, 1 }
0x108a   :  { %v1969_v63 = vrot.slane %v1968_v54, 4  ;;  %v1728_v9 = vadd.f32 %v2942_v3, %v1727_v16  ;;  %v2031_v1 = vmax.f32 %v2029_v25, %v2030_v50  ;;  %v2018_v12 = vrot.slane %v2017_v60, 1 }
0x108b   :  { %v1769_v23 = vpop.f32.mrf.mxu3  ;;  %v1992_v28 = vmax.f32 %v1990_v19, %v1991_v2  ;;  %v2010_v39 = vmax.f32 %v2008_v56, %v2009_v17 }
0x108c   :  { %v1970_v14 = vmax.f32 %v1968_v54, %v1969_v63  ;;  %v1791_v15 = vmax.f32 %v1728_v9, 0.0  ;;  %v1770_v7 = vadd.f32 %v2942_v3, %v1769_v23  ;;  %v2032_v37 = vrot.slane %v2031_v1, 4 }
0x108d   :  { %v2000_v54 = vrot.slane %v1999_v57, 1  ;;  %v2019_v25 = vmax.f32 %v2017_v60, %v2018_v12 }
0x108e   :  { %v1971_v53 = vrot.slane %v1970_v14, 2  ;;  %v1887_v33 = vsel %vm1180_vm13, %v1791_v15, -1e+30  ;;  %v1805_v47 = vmax.f32 %v1770_v7, 0.0  ;;  %v2033_v0 = vmax.f32 %v2031_v1, %v2032_v37 }
0x108f   :  { %v1975_v13 = vsel %vm1565_vm8, %v1887_v33, -inf  ;;  %v2001_v9 = vmax.f32 %v1999_v57, %v2000_v54  ;;  %v2028_v1 = vmax.f32 %v2026_v61, %v2027_v6 }
0x1090   :  { %v1972_v43 = vmax.f32 %v1970_v14, %v1971_v53  ;;  %v1977_v44 = vmax.f32 %v1975_v13, %v3057_v38  ;;  %v1901_v11 = vsel %vm1194_vm15, %v1805_v47, -1e+30 }
0x1091   :  { %v2038_v36 = vsel %vm1565_vm8, %v1901_v11, -inf }
0x1092   :  { %v1973_v52 = vrot.slane %v1972_v43, 1  ;;  %v1978_v26 = vrot.slane %v1977_v44, 4 }
0x1093   :  { %v1772_v35 = vpop.f32.mrf.mxu3 }
0x1094   :  { %v1974_v22 = vmax.f32 %v1972_v43, %v1973_v52  ;;  %v1979_v38 = vmax.f32 %v1977_v44, %v1978_v26  ;;  %v1773_v34 = vadd.f32 %v2942_v3, %v1772_v35  ;;  %v2034_v3 = vrot.slane %v2033_v0, 2 }
0x1096   :  { %v1980_v58 = vrot.slane %v1979_v38, 2  ;;  %v1806_v45 = vmax.f32 %v1773_v34, 0.0  ;;  %v2069_v8 = vsel %vm145_vm6, %v1974_v22, %v2068_v20  ;;  %v2035_v21 = vmax.f32 %v2033_v0, %v2034_v3 }
0x1097   :  { %2079 = vst.msk [vmem:[#allocation2] sm:$0xff] %vm1565_vm8, %v2069_v8 }
0x1098   :  { %v1981_v40 = vmax.f32 %v1979_v38, %v1980_v58  ;;  %v1902_v49 = vsel %vm1195_vm7, %v1806_v45, -1e+30  ;;  %v2036_v27 = vrot.slane %v2035_v21, 1 }
0x1099   :  { %v2039_v18 = vsel %vm1565_vm8, %v1902_v49, -inf }
0x109a   :  { %v1982_v59 = vrot.slane %v1981_v40, 1  ;;  %v2040_v16 = vmax.f32 %v2038_v36, %v2039_v18  ;;  %v2037_v7 = vmax.f32 %v2035_v21, %v2036_v27 }
0x109c   :  { %v1983_v63 = vmax.f32 %v1981_v40, %v1982_v59  ;;  %v2041_v50 = vrot.slane %v2040_v16, 4 }
0x109e   :  { %v2070_v23 = vsel %vm134_vm4, %v1992_v28, %v1983_v63  ;;  %v2042_v4 = vmax.f32 %v2040_v16, %v2041_v50 }
0x109f   :  { %v2071_v14 = vsel %vm135_vm5, %v2001_v9, %v2070_v23 }
0x10a0   :  { %v2072_v15 = vsel %vm137_vm3, %v2010_v39, %v2071_v14  ;;  %v2043_v51 = vrot.slane %v2042_v4, 2 }
0x10a1   :  { %v2073_v29 = vsel %vm139_vm14, %v2019_v25, %v2072_v15 }
0x10a2   :  { %v2044_v19 = vmax.f32 %v2042_v4, %v2043_v51  ;;  %v2074_v33 = vsel %vm141_vm1, %v2028_v1, %v2073_v29 }
0x10a3   :  { %v2075_v62 = vsel %vm143_vm2, %v2037_v7, %v2074_v33 }
0x10a4   :  { %v2045_v53 = vrot.slane %v2044_v19, 1 }
0x10a6   :  { %v2046_v55 = vmax.f32 %v2044_v19, %v2045_v53 }
0x10a8   :  { %v2076_v41 = vsel %vm145_vm6, %v2046_v55, %v2075_v62 }
0x10a9   :  { %2080 = vst.msk [vmem:[#allocation2 + $0x8] sm:$0xff] %vm1565_vm8, %v2076_v41 }
0x10aa   :  { %2098 = dma.vmem_to_hbm [thread:$0]  %s2091_s17, 256, %s2093_s0, [#allocation3], %s2266_s20, %s2266_s20, %s2267_s9  }
0x10ab   :  { %2261 = dma.done.wait [#allocation3], 256  }
0x10ac   :  { %2262 = vsyncadd [#allocation3], 4294967040 }
0x10ad   :  { %2111 = vsyncpa [#allocation3], 1 }

</bundles_post_ra>
